<compile_context>
chip_gen: v7x
topology: tpu7x:2x2x1
jax: 0.10.0
libtpu: 0.0.40
codegen_flags: <defaults>
</compile_context>

<pallas_src>
import math

import jax
import jax.numpy as jnp
from jax import lax
from jax.experimental import pallas as pl
from jax.experimental.pallas import tpu as pltpu


def _make_kernel(num_heads):
    def kernel(x_ref, y_ref,
               wq_hbm, wk_hbm, wv_hbm, wo_hbm,
               bq_ref, bk_ref, bv_ref, bo_ref,
               o_ref,
               wq_vmem, wk_vmem, wv_vmem, wo_vmem,
               k_vmem, v_vmem, sem):
        qi = pl.program_id(1)

        # Once per batch element (first query tile): pull the weights into
        # single-buffered VMEM scratch and compute the K/V projections, which are
        # then reused by every query tile of this batch element.
        @pl.when(qi == 0)
        def _():
            copies = [
                pltpu.make_async_copy(wq_hbm, wq_vmem, sem.at[0]),
                pltpu.make_async_copy(wk_hbm, wk_vmem, sem.at[1]),
                pltpu.make_async_copy(wv_hbm, wv_vmem, sem.at[2]),
                pltpu.make_async_copy(wo_hbm, wo_vmem, sem.at[3]),
            ]
            for c in copies:
                c.start()
            for c in copies:
                c.wait()

            y_bf = y_ref[0]                                   # (Skv, C) bf16
            for h in range(num_heads):
                k_h = jnp.dot(y_bf, wk_vmem[h],
                              preferred_element_type=jnp.float32) + bk_ref[h]
                v_h = jnp.dot(y_bf, wv_vmem[h],
                              preferred_element_type=jnp.float32) + bv_ref[h]
                k_vmem[h] = k_h.astype(jnp.bfloat16)          # (Skv, Dh)
                v_vmem[h] = v_h.astype(jnp.bfloat16)

        x_bf = x_ref[0]                                       # (TQ, E) bf16
        out = None
        for h in range(num_heads):
            # Q projection (softmax scale already folded into Wq/bq in the wrapper).
            q_h = jnp.dot(x_bf, wq_vmem[h],
                          preferred_element_type=jnp.float32) + bq_ref[h]   # (TQ, Dh)
            # scores = q_h @ k_h^T, contracting the last dim of both (no transpose).
            s = lax.dot_general(q_h.astype(jnp.bfloat16), k_vmem[h],
                                dimension_numbers=(((1,), (1,)), ((), ())),
                                preferred_element_type=jnp.float32)         # (TQ, Skv)
            # Softmax in f32 (v5e has no bf16 VPU/EUP); divide goes to the EUP slot.
            m = jnp.max(s, axis=-1, keepdims=True)
            p = jnp.exp(s - m)
            denom = jnp.sum(p, axis=-1, keepdims=True)
            p = p * pl.reciprocal(denom, approx=True)
            attn_h = jnp.dot(p.astype(jnp.bfloat16), v_vmem[h],
                             preferred_element_type=jnp.float32)            # (TQ, Dh)
            # Per-head slice of the output projection, accumulated in f32.
            contrib = jnp.dot(attn_h.astype(jnp.bfloat16), wo_vmem[h],
                              preferred_element_type=jnp.float32)           # (TQ, E)
            out = contrib if out is None else out + contrib

        o_ref[0] = (out + bo_ref[...]).astype(o_ref.dtype)

    return kernel


def _tpu_budget():
    """(vmem_limit_bytes, max query tile) — safe default fits v7x's 64 MiB VMEM."""
    vmem_limit, max_tq = 48 * 1024 * 1024, 512
    try:
        cap = pltpu.get_tpu_info().vmem_capacity_bytes
        if cap >= 100 * 1024 * 1024:          # v5e / v6e class (128 MiB VMEM)
            vmem_limit, max_tq = 96 * 1024 * 1024, 1024
    except Exception:
        pass
    return vmem_limit, max_tq


def _pick_tq(sq, max_tq):
    """Return (TQ, padded Sq). Prefers large 128-aligned tiles; pads instead of
    silently reverting to one huge un-tiled block when Sq is large and awkward."""
    for t in (1024, 512, 256, 128):
        if t <= max_tq and sq % t == 0:
            return t, sq
    if sq <= max_tq:
        return sq, sq                          # single block == full dim (legal)
    t = min(max_tq, 512)
    return t, ((sq + t - 1) // t) * t          # pad Sq up to a tile multiple


def cross_attention(x, y, params, num_heads):
    """x: (B, Sq, E) float32; y: (B, Skv, C) float32. Returns (B, Sq, E) float32."""
    B, Sq, E = x.shape
    _, Skv, C = y.shape
    assert E % num_heads == 0
    Dh = E // num_heads
    scale = 1.0 / math.sqrt(Dh)

    wq, bq, wk, bk, wv, bv, wo, bo = params

    # Head-leading (in, head_dim) layout, built once in XLA; softmax scale folded
    # into the Q projection; bf16 weights (f32 MXU accumulation), f32 biases.
    wq_h = (wq.reshape(num_heads, Dh, E).transpose(0, 2, 1) * scale).astype(jnp.bfloat16)  # (H,E,Dh)
    wk_h = wk.reshape(num_heads, Dh, C).transpose(0, 2, 1).astype(jnp.bfloat16)            # (H,C,Dh)
    wv_h = wv.reshape(num_heads, Dh, C).transpose(0, 2, 1).astype(jnp.bfloat16)            # (H,C,Dh)
    wo_h = wo.T.reshape(num_heads, Dh, E).astype(jnp.bfloat16)                             # (H,Dh,E)
    bq_h = (bq * scale).reshape(num_heads, 1, Dh).astype(jnp.float32)
    bk_h = bk.reshape(num_heads, 1, Dh).astype(jnp.float32)
    bv_h = bv.reshape(num_heads, 1, Dh).astype(jnp.float32)
    bo_2 = bo.reshape(1, E).astype(jnp.float32)

    x_bf = x.astype(jnp.bfloat16)
    y_bf = y.astype(jnp.bfloat16)

    vmem_limit, max_tq = _tpu_budget()
    TQ, Sq_pad = _pick_tq(Sq, max_tq)
    if Sq_pad != Sq:
        x_bf = jnp.pad(x_bf, ((0, 0), (0, Sq_pad - Sq), (0, 0)))
    n_q = Sq_pad // TQ

    kernel = _make_kernel(num_heads)

    def full_spec(shape):
        return pl.BlockSpec(shape, lambda b, qi, _s=shape: (0,) * len(_s))

    any_spec = pl.BlockSpec(memory_space=pl.ANY)

    flops = 2 * B * (Sq_pad * E * E           # Q projection
                     + 2 * Skv * C * E        # K/V projections
                     + 2 * Sq_pad * Skv * E   # QK^T + PV
                     + Sq_pad * E * E)        # output projection
    bytes_accessed = ((x_bf.size + y_bf.size) * 2 + B * Sq_pad * E * 4
                      + (wq_h.size + wk_h.size + wv_h.size + wo_h.size) * 2
                      + (bq_h.size + bk_h.size + bv_h.size + bo_2.size) * 4)
    cost = pl.CostEstimate(flops=int(flops),
                           transcendentals=int(B * num_heads * Sq_pad * Skv),
                           bytes_accessed=int(bytes_accessed))

    out = pl.pallas_call(
        kernel,
        out_shape=jax.ShapeDtypeStruct((B, Sq_pad, E), jnp.float32),
        grid=(B, n_q),
        in_specs=[
            pl.BlockSpec((1, TQ, E), lambda b, qi: (b, qi, 0)),     # x query tile
            pl.BlockSpec((1, Skv, C), lambda b, qi: (b, 0, 0)),     # y (constant over qi)
            any_spec, any_spec, any_spec, any_spec,                 # weights stay in HBM
            full_spec((num_heads, 1, Dh)),                          # bq (scaled)
            full_spec((num_heads, 1, Dh)),                          # bk
            full_spec((num_heads, 1, Dh)),                          # bv
            full_spec((1, E)),                                      # bo
        ],
        out_specs=pl.BlockSpec((1, TQ, E), lambda b, qi: (b, qi, 0)),
        scratch_shapes=[
            pltpu.VMEM((num_heads, E, Dh), jnp.bfloat16),    # Wq  (single-buffered)
            pltpu.VMEM((num_heads, C, Dh), jnp.bfloat16),    # Wk
            pltpu.VMEM((num_heads, C, Dh), jnp.bfloat16),    # Wv
            pltpu.VMEM((num_heads, Dh, E), jnp.bfloat16),    # Wo
            pltpu.VMEM((num_heads, Skv, Dh), jnp.bfloat16),  # K   (per-batch persistent)
            pltpu.VMEM((num_heads, Skv, Dh), jnp.bfloat16),  # V
            pltpu.SemaphoreType.DMA((4,)),
        ],
        compiler_params=pltpu.CompilerParams(
            dimension_semantics=("parallel", "arbitrary"),
            vmem_limit_bytes=vmem_limit),
        cost_estimate=cost,
    )(x_bf, y_bf, wq_h, wk_h, wv_h, wo_h, bq_h, bk_h, bv_h, bo_2)

    return out[:, :Sq, :] if Sq_pad != Sq else out


def cross_attention_reference(x, y, params, num_heads):
    """Pure-JAX f32 reference matching the PyTorch forward."""
    wq, bq, wk, bk, wv, bv, wo, bo = params
    B, Sq, E = x.shape
    _, Skv, C = y.shape
    Dh = E // num_heads
    q = x @ wq.T + bq
    k = y @ wk.T + bk
    v = y @ wv.T + bv
    q = q.reshape(B, Sq, num_heads, Dh).transpose(0, 2, 1, 3)
    k = k.reshape(B, Skv, num_heads, Dh).transpose(0, 2, 1, 3)
    v = v.reshape(B, Skv, num_heads, Dh).transpose(0, 2, 1, 3)
    s = jnp.einsum("bhqd,bhkd->bhqk", q, k) / math.sqrt(Dh)
    p = jax.nn.softmax(s, axis=-1)
    o = jnp.einsum("bhqk,bhkd->bhqd", p, v)
    o = o.transpose(0, 2, 1, 3).reshape(B, Sq, E)
    return o @ wo.T + bo


def init_params(key, embed_dim, cross_dim):
    """Deterministic nn.Linear-style init (uniform(-1/sqrt(fan_in), 1/sqrt(fan_in)))."""
    keys = jax.random.split(key, 8)

    def linear(kw, kb, out_dim, in_dim):
        bound = 1.0 / math.sqrt(in_dim)
        w = jax.random.uniform(kw, (out_dim, in_dim), jnp.float32, -bound, bound)
        b = jax.random.uniform(kb, (out_dim,), jnp.float32, -bound, bound)
        return w, b

    wq, bq = linear(keys[0], keys[1], embed_dim, embed_dim)
    wk, bk = linear(keys[2], keys[3], embed_dim, cross_dim)
    wv, bv = linear(keys[4], keys[5], embed_dim, cross_dim)
    wo, bo = linear(keys[6], keys[7], embed_dim, embed_dim)
    return (wq, bq, wk, bk, wv, bv, wo, bo)


if __name__ == "__main__":
    num_heads = 4
    embed_dim = 32
    cross_dim = 24
    B, Sq, Skv = 2, 8, 8

    key = jax.random.PRNGKey(0)
    kx, ky, kp = jax.random.split(key, 3)
    x = jax.random.normal(kx, (B, Sq, embed_dim), jnp.float32)
    y = jax.random.normal(ky, (B, Skv, cross_dim), jnp.float32)
    params = init_params(kp, embed_dim, cross_dim)

    out = cross_attention(x, y, params, num_heads)
    out = jax.block_until_ready(out)

    ref = cross_attention_reference(x, y, params, num_heads)
    assert out.shape == (B, Sq, embed_dim)
    # bf16 MXU operands (f32 accumulation) + approx reciprocal -> compare against the
    # f32 reference with a correspondingly loosened tolerance.
    max_err = float(jnp.max(jnp.abs(out - ref)))
    assert jnp.allclose(out, ref, atol=3e-2, rtol=3e-2), \
        f"mismatch vs reference (max abs err {max_err})"

    print("KERNEL_OK")
</pallas_src>

<mosaic_0001>
module attributes {stable_mosaic.version = 11 : i64} {
  func.func @kernel(%arg0: i32, %arg1: i32, %arg2: memref<1x8x32xbf16, #tpu.memory_space<vmem>>, %arg3: memref<1x8x24xbf16, #tpu.memory_space<vmem>>, %arg4: memref<4x32x8xbf16, #tpu.memory_space<any>>, %arg5: memref<4x24x8xbf16, #tpu.memory_space<any>>, %arg6: memref<4x24x8xbf16, #tpu.memory_space<any>>, %arg7: memref<4x8x32xbf16, #tpu.memory_space<any>>, %arg8: memref<4x1x8xf32, #tpu.memory_space<vmem>>, %arg9: memref<4x1x8xf32, #tpu.memory_space<vmem>>, %arg10: memref<4x1x8xf32, #tpu.memory_space<vmem>>, %arg11: memref<1x32xf32, #tpu.memory_space<vmem>>, %arg12: memref<1x8x32xf32, #tpu.memory_space<vmem>>, %arg13: memref<4x32x8xbf16, #tpu.memory_space<vmem>>, %arg14: memref<4x24x8xbf16, #tpu.memory_space<vmem>>, %arg15: memref<4x24x8xbf16, #tpu.memory_space<vmem>>, %arg16: memref<4x8x32xbf16, #tpu.memory_space<vmem>>, %arg17: memref<4x8x8xbf16, #tpu.memory_space<vmem>>, %arg18: memref<4x8x8xbf16, #tpu.memory_space<vmem>>, %arg19: memref<4x!tpu.dma_semaphore, #tpu.memory_space<semaphore_mem>>) attributes {dimension_semantics = [#tpu.dimension_semantics<parallel>, #tpu.dimension_semantics<arbitrary>], iteration_bounds = array<i64: 2, 1>, scalar_prefetch = 0 : i64, scratch_operands = 7 : i64, tpu.core_type = #tpu.core_type<tc>, window_params = [{transform_indices = @transform_0, window_bounds = array<i64: 1, 8, 32>}, {transform_indices = @transform_1, window_bounds = array<i64: 1, 8, 24>}, {}, {}, {}, {}, {pipeline_mode = #tpu.pipeline_mode<synchronous>, transform_indices = @transform_6, window_bounds = array<i64: 4, 1, 8>}, {pipeline_mode = #tpu.pipeline_mode<synchronous>, transform_indices = @transform_7, window_bounds = array<i64: 4, 1, 8>}, {pipeline_mode = #tpu.pipeline_mode<synchronous>, transform_indices = @transform_8, window_bounds = array<i64: 4, 1, 8>}, {pipeline_mode = #tpu.pipeline_mode<synchronous>, transform_indices = @transform_9, window_bounds = array<i64: 1, 32>}, {transform_indices = @transform_10, window_bounds = array<i64: 1, 8, 32>}]} {
    %c0_i32 = arith.constant 0 : i32
    %0 = arith.cmpi eq, %arg1, %c0_i32 : i32
    %1 = arith.extui %0 : i1 to i32
    %c0_i32_0 = arith.constant 0 : i32
    %2 = arith.cmpi ne, %1, %c0_i32_0 : i32
    scf.if %2 {
      %c0_i32_88 = arith.constant 0 : i32
      %130 = tpu.memref_slice %arg19[%c0_i32_88] : memref<4x!tpu.dma_semaphore, #tpu.memory_space<semaphore_mem>> -> memref<1x!tpu.dma_semaphore, #tpu.memory_space<semaphore_mem>>
      %131 = tpu.memref_squeeze %130 : memref<1x!tpu.dma_semaphore, #tpu.memory_space<semaphore_mem>> -> memref<!tpu.dma_semaphore, #tpu.memory_space<semaphore_mem>>
      tpu.enqueue_dma source(%arg4 : memref<4x32x8xbf16, #tpu.memory_space<any>>) target(%arg13 : memref<4x32x8xbf16, #tpu.memory_space<vmem>>) target_semaphore(%131 : memref<!tpu.dma_semaphore, #tpu.memory_space<semaphore_mem>>)
      %c1_i32 = arith.constant 1 : i32
      %132 = tpu.memref_slice %arg19[%c1_i32] : memref<4x!tpu.dma_semaphore, #tpu.memory_space<semaphore_mem>> -> memref<1x!tpu.dma_semaphore, #tpu.memory_space<semaphore_mem>>
      %133 = tpu.memref_squeeze %132 : memref<1x!tpu.dma_semaphore, #tpu.memory_space<semaphore_mem>> -> memref<!tpu.dma_semaphore, #tpu.memory_space<semaphore_mem>>
      tpu.enqueue_dma source(%arg5 : memref<4x24x8xbf16, #tpu.memory_space<any>>) target(%arg14 : memref<4x24x8xbf16, #tpu.memory_space<vmem>>) target_semaphore(%133 : memref<!tpu.dma_semaphore, #tpu.memory_space<semaphore_mem>>)
      %c2_i32 = arith.constant 2 : i32
      %134 = tpu.memref_slice %arg19[%c2_i32] : memref<4x!tpu.dma_semaphore, #tpu.memory_space<semaphore_mem>> -> memref<1x!tpu.dma_semaphore, #tpu.memory_space<semaphore_mem>>
      %135 = tpu.memref_squeeze %134 : memref<1x!tpu.dma_semaphore, #tpu.memory_space<semaphore_mem>> -> memref<!tpu.dma_semaphore, #tpu.memory_space<semaphore_mem>>
      tpu.enqueue_dma source(%arg6 : memref<4x24x8xbf16, #tpu.memory_space<any>>) target(%arg15 : memref<4x24x8xbf16, #tpu.memory_space<vmem>>) target_semaphore(%135 : memref<!tpu.dma_semaphore, #tpu.memory_space<semaphore_mem>>)
      %c3_i32 = arith.constant 3 : i32
      %136 = tpu.memref_slice %arg19[%c3_i32] : memref<4x!tpu.dma_semaphore, #tpu.memory_space<semaphore_mem>> -> memref<1x!tpu.dma_semaphore, #tpu.memory_space<semaphore_mem>>
      %137 = tpu.memref_squeeze %136 : memref<1x!tpu.dma_semaphore, #tpu.memory_space<semaphore_mem>> -> memref<!tpu.dma_semaphore, #tpu.memory_space<semaphore_mem>>
      tpu.enqueue_dma source(%arg7 : memref<4x8x32xbf16, #tpu.memory_space<any>>) target(%arg16 : memref<4x8x32xbf16, #tpu.memory_space<vmem>>) target_semaphore(%137 : memref<!tpu.dma_semaphore, #tpu.memory_space<semaphore_mem>>)
      %c0_i32_89 = arith.constant 0 : i32
      %138 = tpu.memref_slice %arg19[%c0_i32_89] : memref<4x!tpu.dma_semaphore, #tpu.memory_space<semaphore_mem>> -> memref<1x!tpu.dma_semaphore, #tpu.memory_space<semaphore_mem>>
      %139 = tpu.memref_squeeze %138 : memref<1x!tpu.dma_semaphore, #tpu.memory_space<semaphore_mem>> -> memref<!tpu.dma_semaphore, #tpu.memory_space<semaphore_mem>>
      tpu.wait_dma2 semaphore(%139 : memref<!tpu.dma_semaphore, #tpu.memory_space<semaphore_mem>>) src(%arg4 : memref<4x32x8xbf16, #tpu.memory_space<any>>) dst(%arg13 : memref<4x32x8xbf16, #tpu.memory_space<vmem>>)
      %c1_i32_90 = arith.constant 1 : i32
      %140 = tpu.memref_slice %arg19[%c1_i32_90] : memref<4x!tpu.dma_semaphore, #tpu.memory_space<semaphore_mem>> -> memref<1x!tpu.dma_semaphore, #tpu.memory_space<semaphore_mem>>
      %141 = tpu.memref_squeeze %140 : memref<1x!tpu.dma_semaphore, #tpu.memory_space<semaphore_mem>> -> memref<!tpu.dma_semaphore, #tpu.memory_space<semaphore_mem>>
      tpu.wait_dma2 semaphore(%141 : memref<!tpu.dma_semaphore, #tpu.memory_space<semaphore_mem>>) src(%arg5 : memref<4x24x8xbf16, #tpu.memory_space<any>>) dst(%arg14 : memref<4x24x8xbf16, #tpu.memory_space<vmem>>)
      %c2_i32_91 = arith.constant 2 : i32
      %142 = tpu.memref_slice %arg19[%c2_i32_91] : memref<4x!tpu.dma_semaphore, #tpu.memory_space<semaphore_mem>> -> memref<1x!tpu.dma_semaphore, #tpu.memory_space<semaphore_mem>>
      %143 = tpu.memref_squeeze %142 : memref<1x!tpu.dma_semaphore, #tpu.memory_space<semaphore_mem>> -> memref<!tpu.dma_semaphore, #tpu.memory_space<semaphore_mem>>
      tpu.wait_dma2 semaphore(%143 : memref<!tpu.dma_semaphore, #tpu.memory_space<semaphore_mem>>) src(%arg6 : memref<4x24x8xbf16, #tpu.memory_space<any>>) dst(%arg15 : memref<4x24x8xbf16, #tpu.memory_space<vmem>>)
      %c3_i32_92 = arith.constant 3 : i32
      %144 = tpu.memref_slice %arg19[%c3_i32_92] : memref<4x!tpu.dma_semaphore, #tpu.memory_space<semaphore_mem>> -> memref<1x!tpu.dma_semaphore, #tpu.memory_space<semaphore_mem>>
      %145 = tpu.memref_squeeze %144 : memref<1x!tpu.dma_semaphore, #tpu.memory_space<semaphore_mem>> -> memref<!tpu.dma_semaphore, #tpu.memory_space<semaphore_mem>>
      tpu.wait_dma2 semaphore(%145 : memref<!tpu.dma_semaphore, #tpu.memory_space<semaphore_mem>>) src(%arg7 : memref<4x8x32xbf16, #tpu.memory_space<any>>) dst(%arg16 : memref<4x8x32xbf16, #tpu.memory_space<vmem>>)
      %c0_93 = arith.constant 0 : index
      %c0_94 = arith.constant 0 : index
      %c0_95 = arith.constant 0 : index
      %146 = vector.load %arg3[%c0_93, %c0_94, %c0_95] : memref<1x8x24xbf16, #tpu.memory_space<vmem>>, vector<1x8x24xbf16>
      %147 = vector.shape_cast %146 : vector<1x8x24xbf16> to vector<8x24xbf16>
      %c0_96 = arith.constant 0 : index
      %c0_97 = arith.constant 0 : index
      %c0_98 = arith.constant 0 : index
      %148 = vector.load %arg14[%c0_96, %c0_97, %c0_98] : memref<4x24x8xbf16, #tpu.memory_space<vmem>>, vector<1x24x8xbf16>
      %149 = vector.shape_cast %148 : vector<1x24x8xbf16> to vector<24x8xbf16>
      %cst_99 = arith.constant dense<0.000000e+00> : vector<8x8xf32>
      %150 = tpu.matmul %147, %149, %cst_99 {dimension_numbers = #tpu.dot_dimension_numbers<[1], [0], [0], [1], [0, 0, 1, 1], [], []>} : vector<8x24xbf16>, vector<24x8xbf16>, vector<8x8xf32> -> vector<8x8xf32>
      %c0_100 = arith.constant 0 : index
      %c0_101 = arith.constant 0 : index
      %c0_102 = arith.constant 0 : index
      %151 = vector.load %arg9[%c0_100, %c0_101, %c0_102] : memref<4x1x8xf32, #tpu.memory_space<vmem>>, vector<1x1x8xf32>
      %152 = vector.shape_cast %151 : vector<1x1x8xf32> to vector<1x8xf32>
      %153 = vector.broadcast %152 : vector<1x8xf32> to vector<8x8xf32>
      %154 = arith.addf %150, %153 : vector<8x8xf32>
      %c0_103 = arith.constant 0 : index
      %c0_104 = arith.constant 0 : index
      %c0_105 = arith.constant 0 : index
      %155 = vector.load %arg15[%c0_103, %c0_104, %c0_105] : memref<4x24x8xbf16, #tpu.memory_space<vmem>>, vector<1x24x8xbf16>
      %156 = vector.shape_cast %155 : vector<1x24x8xbf16> to vector<24x8xbf16>
      %cst_106 = arith.constant dense<0.000000e+00> : vector<8x8xf32>
      %157 = tpu.matmul %147, %156, %cst_106 {dimension_numbers = #tpu.dot_dimension_numbers<[1], [0], [0], [1], [0, 0, 1, 1], [], []>} : vector<8x24xbf16>, vector<24x8xbf16>, vector<8x8xf32> -> vector<8x8xf32>
      %c0_107 = arith.constant 0 : index
      %c0_108 = arith.constant 0 : index
      %c0_109 = arith.constant 0 : index
      %158 = vector.load %arg10[%c0_107, %c0_108, %c0_109] : memref<4x1x8xf32, #tpu.memory_space<vmem>>, vector<1x1x8xf32>
      %159 = vector.shape_cast %158 : vector<1x1x8xf32> to vector<1x8xf32>
      %160 = vector.broadcast %159 : vector<1x8xf32> to vector<8x8xf32>
      %161 = arith.addf %157, %160 : vector<8x8xf32>
      %162 = arith.truncf %154 : vector<8x8xf32> to vector<8x8xbf16>
      %c0_110 = arith.constant 0 : index
      %c0_111 = arith.constant 0 : index
      %c0_112 = arith.constant 0 : index
      %163 = vector.load %arg17[%c0_110, %c0_111, %c0_112] : memref<4x8x8xbf16, #tpu.memory_space<vmem>>, vector<1x8x8xbf16>
      %164 = vector.shape_cast %163 : vector<1x8x8xbf16> to vector<8x8xbf16>
      %165 = vector.shape_cast %162 : vector<8x8xbf16> to vector<1x8x8xbf16>
      tpu.vector_store %arg17[%c0_110, %c0_111, %c0_112], %165 {strides = array<i32>} : memref<4x8x8xbf16, #tpu.memory_space<vmem>>, vector<1x8x8xbf16>,
      %166 = arith.truncf %161 : vector<8x8xf32> to vector<8x8xbf16>
      %c0_113 = arith.constant 0 : index
      %c0_114 = arith.constant 0 : index
      %c0_115 = arith.constant 0 : index
      %167 = vector.load %arg18[%c0_113, %c0_114, %c0_115] : memref<4x8x8xbf16, #tpu.memory_space<vmem>>, vector<1x8x8xbf16>
      %168 = vector.shape_cast %167 : vector<1x8x8xbf16> to vector<8x8xbf16>
      %169 = vector.shape_cast %166 : vector<8x8xbf16> to vector<1x8x8xbf16>
      tpu.vector_store %arg18[%c0_113, %c0_114, %c0_115], %169 {strides = array<i32>} : memref<4x8x8xbf16, #tpu.memory_space<vmem>>, vector<1x8x8xbf16>,
      %c1_116 = arith.constant 1 : index
      %c0_117 = arith.constant 0 : index
      %c0_118 = arith.constant 0 : index
      %170 = vector.load %arg14[%c1_116, %c0_117, %c0_118] : memref<4x24x8xbf16, #tpu.memory_space<vmem>>, vector<1x24x8xbf16>
      %171 = vector.shape_cast %170 : vector<1x24x8xbf16> to vector<24x8xbf16>
      %cst_119 = arith.constant dense<0.000000e+00> : vector<8x8xf32>
      %172 = tpu.matmul %147, %171, %cst_119 {dimension_numbers = #tpu.dot_dimension_numbers<[1], [0], [0], [1], [0, 0, 1, 1], [], []>} : vector<8x24xbf16>, vector<24x8xbf16>, vector<8x8xf32> -> vector<8x8xf32>
      %c1_120 = arith.constant 1 : index
      %c0_121 = arith.constant 0 : index
      %c0_122 = arith.constant 0 : index
      %173 = vector.load %arg9[%c1_120, %c0_121, %c0_122] : memref<4x1x8xf32, #tpu.memory_space<vmem>>, vector<1x1x8xf32>
      %174 = vector.shape_cast %173 : vector<1x1x8xf32> to vector<1x8xf32>
      %175 = vector.broadcast %174 : vector<1x8xf32> to vector<8x8xf32>
      %176 = arith.addf %172, %175 : vector<8x8xf32>
      %c1_123 = arith.constant 1 : index
      %c0_124 = arith.constant 0 : index
      %c0_125 = arith.constant 0 : index
      %177 = vector.load %arg15[%c1_123, %c0_124, %c0_125] : memref<4x24x8xbf16, #tpu.memory_space<vmem>>, vector<1x24x8xbf16>
      %178 = vector.shape_cast %177 : vector<1x24x8xbf16> to vector<24x8xbf16>
      %cst_126 = arith.constant dense<0.000000e+00> : vector<8x8xf32>
      %179 = tpu.matmul %147, %178, %cst_126 {dimension_numbers = #tpu.dot_dimension_numbers<[1], [0], [0], [1], [0, 0, 1, 1], [], []>} : vector<8x24xbf16>, vector<24x8xbf16>, vector<8x8xf32> -> vector<8x8xf32>
      %c1_127 = arith.constant 1 : index
      %c0_128 = arith.constant 0 : index
      %c0_129 = arith.constant 0 : index
      %180 = vector.load %arg10[%c1_127, %c0_128, %c0_129] : memref<4x1x8xf32, #tpu.memory_space<vmem>>, vector<1x1x8xf32>
      %181 = vector.shape_cast %180 : vector<1x1x8xf32> to vector<1x8xf32>
      %182 = vector.broadcast %181 : vector<1x8xf32> to vector<8x8xf32>
      %183 = arith.addf %179, %182 : vector<8x8xf32>
      %184 = arith.truncf %176 : vector<8x8xf32> to vector<8x8xbf16>
      %c1_130 = arith.constant 1 : index
      %c0_131 = arith.constant 0 : index
      %c0_132 = arith.constant 0 : index
      %185 = vector.load %arg17[%c1_130, %c0_131, %c0_132] : memref<4x8x8xbf16, #tpu.memory_space<vmem>>, vector<1x8x8xbf16>
      %186 = vector.shape_cast %185 : vector<1x8x8xbf16> to vector<8x8xbf16>
      %187 = vector.shape_cast %184 : vector<8x8xbf16> to vector<1x8x8xbf16>
      tpu.vector_store %arg17[%c1_130, %c0_131, %c0_132], %187 {strides = array<i32>} : memref<4x8x8xbf16, #tpu.memory_space<vmem>>, vector<1x8x8xbf16>,
      %188 = arith.truncf %183 : vector<8x8xf32> to vector<8x8xbf16>
      %c1_133 = arith.constant 1 : index
      %c0_134 = arith.constant 0 : index
      %c0_135 = arith.constant 0 : index
      %189 = vector.load %arg18[%c1_133, %c0_134, %c0_135] : memref<4x8x8xbf16, #tpu.memory_space<vmem>>, vector<1x8x8xbf16>
      %190 = vector.shape_cast %189 : vector<1x8x8xbf16> to vector<8x8xbf16>
      %191 = vector.shape_cast %188 : vector<8x8xbf16> to vector<1x8x8xbf16>
      tpu.vector_store %arg18[%c1_133, %c0_134, %c0_135], %191 {strides = array<i32>} : memref<4x8x8xbf16, #tpu.memory_space<vmem>>, vector<1x8x8xbf16>,
      %c2_136 = arith.constant 2 : index
      %c0_137 = arith.constant 0 : index
      %c0_138 = arith.constant 0 : index
      %192 = vector.load %arg14[%c2_136, %c0_137, %c0_138] : memref<4x24x8xbf16, #tpu.memory_space<vmem>>, vector<1x24x8xbf16>
      %193 = vector.shape_cast %192 : vector<1x24x8xbf16> to vector<24x8xbf16>
      %cst_139 = arith.constant dense<0.000000e+00> : vector<8x8xf32>
      %194 = tpu.matmul %147, %193, %cst_139 {dimension_numbers = #tpu.dot_dimension_numbers<[1], [0], [0], [1], [0, 0, 1, 1], [], []>} : vector<8x24xbf16>, vector<24x8xbf16>, vector<8x8xf32> -> vector<8x8xf32>
      %c2_140 = arith.constant 2 : index
      %c0_141 = arith.constant 0 : index
      %c0_142 = arith.constant 0 : index
      %195 = vector.load %arg9[%c2_140, %c0_141, %c0_142] : memref<4x1x8xf32, #tpu.memory_space<vmem>>, vector<1x1x8xf32>
      %196 = vector.shape_cast %195 : vector<1x1x8xf32> to vector<1x8xf32>
      %197 = vector.broadcast %196 : vector<1x8xf32> to vector<8x8xf32>
      %198 = arith.addf %194, %197 : vector<8x8xf32>
      %c2_143 = arith.constant 2 : index
      %c0_144 = arith.constant 0 : index
      %c0_145 = arith.constant 0 : index
      %199 = vector.load %arg15[%c2_143, %c0_144, %c0_145] : memref<4x24x8xbf16, #tpu.memory_space<vmem>>, vector<1x24x8xbf16>
      %200 = vector.shape_cast %199 : vector<1x24x8xbf16> to vector<24x8xbf16>
      %cst_146 = arith.constant dense<0.000000e+00> : vector<8x8xf32>
      %201 = tpu.matmul %147, %200, %cst_146 {dimension_numbers = #tpu.dot_dimension_numbers<[1], [0], [0], [1], [0, 0, 1, 1], [], []>} : vector<8x24xbf16>, vector<24x8xbf16>, vector<8x8xf32> -> vector<8x8xf32>
      %c2_147 = arith.constant 2 : index
      %c0_148 = arith.constant 0 : index
      %c0_149 = arith.constant 0 : index
      %202 = vector.load %arg10[%c2_147, %c0_148, %c0_149] : memref<4x1x8xf32, #tpu.memory_space<vmem>>, vector<1x1x8xf32>
      %203 = vector.shape_cast %202 : vector<1x1x8xf32> to vector<1x8xf32>
      %204 = vector.broadcast %203 : vector<1x8xf32> to vector<8x8xf32>
      %205 = arith.addf %201, %204 : vector<8x8xf32>
      %206 = arith.truncf %198 : vector<8x8xf32> to vector<8x8xbf16>
      %c2_150 = arith.constant 2 : index
      %c0_151 = arith.constant 0 : index
      %c0_152 = arith.constant 0 : index
      %207 = vector.load %arg17[%c2_150, %c0_151, %c0_152] : memref<4x8x8xbf16, #tpu.memory_space<vmem>>, vector<1x8x8xbf16>
      %208 = vector.shape_cast %207 : vector<1x8x8xbf16> to vector<8x8xbf16>
      %209 = vector.shape_cast %206 : vector<8x8xbf16> to vector<1x8x8xbf16>
      tpu.vector_store %arg17[%c2_150, %c0_151, %c0_152], %209 {strides = array<i32>} : memref<4x8x8xbf16, #tpu.memory_space<vmem>>, vector<1x8x8xbf16>,
      %210 = arith.truncf %205 : vector<8x8xf32> to vector<8x8xbf16>
      %c2_153 = arith.constant 2 : index
      %c0_154 = arith.constant 0 : index
      %c0_155 = arith.constant 0 : index
      %211 = vector.load %arg18[%c2_153, %c0_154, %c0_155] : memref<4x8x8xbf16, #tpu.memory_space<vmem>>, vector<1x8x8xbf16>
      %212 = vector.shape_cast %211 : vector<1x8x8xbf16> to vector<8x8xbf16>
      %213 = vector.shape_cast %210 : vector<8x8xbf16> to vector<1x8x8xbf16>
      tpu.vector_store %arg18[%c2_153, %c0_154, %c0_155], %213 {strides = array<i32>} : memref<4x8x8xbf16, #tpu.memory_space<vmem>>, vector<1x8x8xbf16>,
      %c3_156 = arith.constant 3 : index
      %c0_157 = arith.constant 0 : index
      %c0_158 = arith.constant 0 : index
      %214 = vector.load %arg14[%c3_156, %c0_157, %c0_158] : memref<4x24x8xbf16, #tpu.memory_space<vmem>>, vector<1x24x8xbf16>
      %215 = vector.shape_cast %214 : vector<1x24x8xbf16> to vector<24x8xbf16>
      %cst_159 = arith.constant dense<0.000000e+00> : vector<8x8xf32>
      %216 = tpu.matmul %147, %215, %cst_159 {dimension_numbers = #tpu.dot_dimension_numbers<[1], [0], [0], [1], [0, 0, 1, 1], [], []>} : vector<8x24xbf16>, vector<24x8xbf16>, vector<8x8xf32> -> vector<8x8xf32>
      %c3_160 = arith.constant 3 : index
      %c0_161 = arith.constant 0 : index
      %c0_162 = arith.constant 0 : index
      %217 = vector.load %arg9[%c3_160, %c0_161, %c0_162] : memref<4x1x8xf32, #tpu.memory_space<vmem>>, vector<1x1x8xf32>
      %218 = vector.shape_cast %217 : vector<1x1x8xf32> to vector<1x8xf32>
      %219 = vector.broadcast %218 : vector<1x8xf32> to vector<8x8xf32>
      %220 = arith.addf %216, %219 : vector<8x8xf32>
      %c3_163 = arith.constant 3 : index
      %c0_164 = arith.constant 0 : index
      %c0_165 = arith.constant 0 : index
      %221 = vector.load %arg15[%c3_163, %c0_164, %c0_165] : memref<4x24x8xbf16, #tpu.memory_space<vmem>>, vector<1x24x8xbf16>
      %222 = vector.shape_cast %221 : vector<1x24x8xbf16> to vector<24x8xbf16>
      %cst_166 = arith.constant dense<0.000000e+00> : vector<8x8xf32>
      %223 = tpu.matmul %147, %222, %cst_166 {dimension_numbers = #tpu.dot_dimension_numbers<[1], [0], [0], [1], [0, 0, 1, 1], [], []>} : vector<8x24xbf16>, vector<24x8xbf16>, vector<8x8xf32> -> vector<8x8xf32>
      %c3_167 = arith.constant 3 : index
      %c0_168 = arith.constant 0 : index
      %c0_169 = arith.constant 0 : index
      %224 = vector.load %arg10[%c3_167, %c0_168, %c0_169] : memref<4x1x8xf32, #tpu.memory_space<vmem>>, vector<1x1x8xf32>
      %225 = vector.shape_cast %224 : vector<1x1x8xf32> to vector<1x8xf32>
      %226 = vector.broadcast %225 : vector<1x8xf32> to vector<8x8xf32>
      %227 = arith.addf %223, %226 : vector<8x8xf32>
      %228 = arith.truncf %220 : vector<8x8xf32> to vector<8x8xbf16>
      %c3_170 = arith.constant 3 : index
      %c0_171 = arith.constant 0 : index
      %c0_172 = arith.constant 0 : index
      %229 = vector.load %arg17[%c3_170, %c0_171, %c0_172] : memref<4x8x8xbf16, #tpu.memory_space<vmem>>, vector<1x8x8xbf16>
      %230 = vector.shape_cast %229 : vector<1x8x8xbf16> to vector<8x8xbf16>
      %231 = vector.shape_cast %228 : vector<8x8xbf16> to vector<1x8x8xbf16>
      tpu.vector_store %arg17[%c3_170, %c0_171, %c0_172], %231 {strides = array<i32>} : memref<4x8x8xbf16, #tpu.memory_space<vmem>>, vector<1x8x8xbf16>,
      %232 = arith.truncf %227 : vector<8x8xf32> to vector<8x8xbf16>
      %c3_173 = arith.constant 3 : index
      %c0_174 = arith.constant 0 : index
      %c0_175 = arith.constant 0 : index
      %233 = vector.load %arg18[%c3_173, %c0_174, %c0_175] : memref<4x8x8xbf16, #tpu.memory_space<vmem>>, vector<1x8x8xbf16>
      %234 = vector.shape_cast %233 : vector<1x8x8xbf16> to vector<8x8xbf16>
      %235 = vector.shape_cast %232 : vector<8x8xbf16> to vector<1x8x8xbf16>
      tpu.vector_store %arg18[%c3_173, %c0_174, %c0_175], %235 {strides = array<i32>} : memref<4x8x8xbf16, #tpu.memory_space<vmem>>, vector<1x8x8xbf16>,
    } else {
    }
    %c0 = arith.constant 0 : index
    %c0_1 = arith.constant 0 : index
    %c0_2 = arith.constant 0 : index
    %3 = vector.load %arg2[%c0, %c0_1, %c0_2] : memref<1x8x32xbf16, #tpu.memory_space<vmem>>, vector<1x8x32xbf16>
    %4 = vector.shape_cast %3 : vector<1x8x32xbf16> to vector<8x32xbf16>
    %c0_3 = arith.constant 0 : index
    %c0_4 = arith.constant 0 : index
    %c0_5 = arith.constant 0 : index
    %5 = vector.load %arg13[%c0_3, %c0_4, %c0_5] : memref<4x32x8xbf16, #tpu.memory_space<vmem>>, vector<1x32x8xbf16>
    %6 = vector.shape_cast %5 : vector<1x32x8xbf16> to vector<32x8xbf16>
    %cst = arith.constant dense<0.000000e+00> : vector<8x8xf32>
    %7 = tpu.matmul %4, %6, %cst {dimension_numbers = #tpu.dot_dimension_numbers<[1], [0], [0], [1], [0, 0, 1, 1], [], []>} : vector<8x32xbf16>, vector<32x8xbf16>, vector<8x8xf32> -> vector<8x8xf32>
    %c0_6 = arith.constant 0 : index
    %c0_7 = arith.constant 0 : index
    %c0_8 = arith.constant 0 : index
    %8 = vector.load %arg8[%c0_6, %c0_7, %c0_8] : memref<4x1x8xf32, #tpu.memory_space<vmem>>, vector<1x1x8xf32>
    %9 = vector.shape_cast %8 : vector<1x1x8xf32> to vector<1x8xf32>
    %10 = vector.broadcast %9 : vector<1x8xf32> to vector<8x8xf32>
    %11 = arith.addf %7, %10 : vector<8x8xf32>
    %12 = arith.truncf %11 : vector<8x8xf32> to vector<8x8xbf16>
    %c0_9 = arith.constant 0 : index
    %c0_10 = arith.constant 0 : index
    %c0_11 = arith.constant 0 : index
    %13 = vector.load %arg17[%c0_9, %c0_10, %c0_11] : memref<4x8x8xbf16, #tpu.memory_space<vmem>>, vector<1x8x8xbf16>
    %14 = vector.shape_cast %13 : vector<1x8x8xbf16> to vector<8x8xbf16>
    %cst_12 = arith.constant dense<0.000000e+00> : vector<8x8xf32>
    %15 = tpu.matmul %12, %14, %cst_12 {dimension_numbers = #tpu.dot_dimension_numbers<[1], [1], [0], [0], [0, 0, 1, 0], [], []>} : vector<8x8xbf16>, vector<8x8xbf16>, vector<8x8xf32> -> vector<8x8xf32>
    %cst_13 = arith.constant dense<0xFF800000> : vector<8xf32>
    %16 = vector.multi_reduction <maximumf>, %15, %cst_13 [1] : vector<8x8xf32> to vector<8xf32>
    %17 = vector.shape_cast %16 : vector<8xf32> to vector<8x1xf32>
    %18 = vector.broadcast %17 : vector<8x1xf32> to vector<8x8xf32>
    %19 = arith.subf %15, %18 : vector<8x8xf32>
    %20 = math.exp %19 : vector<8x8xf32>
    %cst_14 = arith.constant dense<0.000000e+00> : vector<8xf32>
    %21 = vector.multi_reduction <add>, %20, %cst_14 [1] : vector<8x8xf32> to vector<8xf32>
    %22 = vector.shape_cast %21 : vector<8xf32> to vector<8x1xf32>
    %23 = tpu.reciprocal %22 {approx = true} : vector<8x1xf32> -> vector<8x1xf32>
    %24 = vector.broadcast %23 : vector<8x1xf32> to vector<8x8xf32>
    %25 = arith.mulf %20, %24 : vector<8x8xf32>
    %26 = arith.truncf %25 : vector<8x8xf32> to vector<8x8xbf16>
    %c0_15 = arith.constant 0 : index
    %c0_16 = arith.constant 0 : index
    %c0_17 = arith.constant 0 : index
    %27 = vector.load %arg18[%c0_15, %c0_16, %c0_17] : memref<4x8x8xbf16, #tpu.memory_space<vmem>>, vector<1x8x8xbf16>
    %28 = vector.shape_cast %27 : vector<1x8x8xbf16> to vector<8x8xbf16>
    %cst_18 = arith.constant dense<0.000000e+00> : vector<8x8xf32>
    %29 = tpu.matmul %26, %28, %cst_18 {dimension_numbers = #tpu.dot_dimension_numbers<[1], [0], [0], [1], [0, 0, 1, 1], [], []>} : vector<8x8xbf16>, vector<8x8xbf16>, vector<8x8xf32> -> vector<8x8xf32>
    %30 = arith.truncf %29 : vector<8x8xf32> to vector<8x8xbf16>
    %c0_19 = arith.constant 0 : index
    %c0_20 = arith.constant 0 : index
    %c0_21 = arith.constant 0 : index
    %31 = vector.load %arg16[%c0_19, %c0_20, %c0_21] : memref<4x8x32xbf16, #tpu.memory_space<vmem>>, vector<1x8x32xbf16>
    %32 = vector.shape_cast %31 : vector<1x8x32xbf16> to vector<8x32xbf16>
    %cst_22 = arith.constant dense<0.000000e+00> : vector<8x32xf32>
    %33 = tpu.matmul %30, %32, %cst_22 {dimension_numbers = #tpu.dot_dimension_numbers<[1], [0], [0], [1], [0, 0, 1, 1], [], []>} : vector<8x8xbf16>, vector<8x32xbf16>, vector<8x32xf32> -> vector<8x32xf32>
    %c1 = arith.constant 1 : index
    %c0_23 = arith.constant 0 : index
    %c0_24 = arith.constant 0 : index
    %34 = vector.load %arg13[%c1, %c0_23, %c0_24] : memref<4x32x8xbf16, #tpu.memory_space<vmem>>, vector<1x32x8xbf16>
    %35 = vector.shape_cast %34 : vector<1x32x8xbf16> to vector<32x8xbf16>
    %cst_25 = arith.constant dense<0.000000e+00> : vector<8x8xf32>
    %36 = tpu.matmul %4, %35, %cst_25 {dimension_numbers = #tpu.dot_dimension_numbers<[1], [0], [0], [1], [0, 0, 1, 1], [], []>} : vector<8x32xbf16>, vector<32x8xbf16>, vector<8x8xf32> -> vector<8x8xf32>
    %c1_26 = arith.constant 1 : index
    %c0_27 = arith.constant 0 : index
    %c0_28 = arith.constant 0 : index
    %37 = vector.load %arg8[%c1_26, %c0_27, %c0_28] : memref<4x1x8xf32, #tpu.memory_space<vmem>>, vector<1x1x8xf32>
    %38 = vector.shape_cast %37 : vector<1x1x8xf32> to vector<1x8xf32>
    %39 = vector.broadcast %38 : vector<1x8xf32> to vector<8x8xf32>
    %40 = arith.addf %36, %39 : vector<8x8xf32>
    %41 = arith.truncf %40 : vector<8x8xf32> to vector<8x8xbf16>
    %c1_29 = arith.constant 1 : index
    %c0_30 = arith.constant 0 : index
    %c0_31 = arith.constant 0 : index
    %42 = vector.load %arg17[%c1_29, %c0_30, %c0_31] : memref<4x8x8xbf16, #tpu.memory_space<vmem>>, vector<1x8x8xbf16>
    %43 = vector.shape_cast %42 : vector<1x8x8xbf16> to vector<8x8xbf16>
    %cst_32 = arith.constant dense<0.000000e+00> : vector<8x8xf32>
    %44 = tpu.matmul %41, %43, %cst_32 {dimension_numbers = #tpu.dot_dimension_numbers<[1], [1], [0], [0], [0, 0, 1, 0], [], []>} : vector<8x8xbf16>, vector<8x8xbf16>, vector<8x8xf32> -> vector<8x8xf32>
    %cst_33 = arith.constant dense<0xFF800000> : vector<8xf32>
    %45 = vector.multi_reduction <maximumf>, %44, %cst_33 [1] : vector<8x8xf32> to vector<8xf32>
    %46 = vector.shape_cast %45 : vector<8xf32> to vector<8x1xf32>
    %47 = vector.broadcast %46 : vector<8x1xf32> to vector<8x8xf32>
    %48 = arith.subf %44, %47 : vector<8x8xf32>
    %49 = math.exp %48 : vector<8x8xf32>
    %cst_34 = arith.constant dense<0.000000e+00> : vector<8xf32>
    %50 = vector.multi_reduction <add>, %49, %cst_34 [1] : vector<8x8xf32> to vector<8xf32>
    %51 = vector.shape_cast %50 : vector<8xf32> to vector<8x1xf32>
    %52 = tpu.reciprocal %51 {approx = true} : vector<8x1xf32> -> vector<8x1xf32>
    %53 = vector.broadcast %52 : vector<8x1xf32> to vector<8x8xf32>
    %54 = arith.mulf %49, %53 : vector<8x8xf32>
    %55 = arith.truncf %54 : vector<8x8xf32> to vector<8x8xbf16>
    %c1_35 = arith.constant 1 : index
    %c0_36 = arith.constant 0 : index
    %c0_37 = arith.constant 0 : index
    %56 = vector.load %arg18[%c1_35, %c0_36, %c0_37] : memref<4x8x8xbf16, #tpu.memory_space<vmem>>, vector<1x8x8xbf16>
    %57 = vector.shape_cast %56 : vector<1x8x8xbf16> to vector<8x8xbf16>
    %cst_38 = arith.constant dense<0.000000e+00> : vector<8x8xf32>
    %58 = tpu.matmul %55, %57, %cst_38 {dimension_numbers = #tpu.dot_dimension_numbers<[1], [0], [0], [1], [0, 0, 1, 1], [], []>} : vector<8x8xbf16>, vector<8x8xbf16>, vector<8x8xf32> -> vector<8x8xf32>
    %59 = arith.truncf %58 : vector<8x8xf32> to vector<8x8xbf16>
    %c1_39 = arith.constant 1 : index
    %c0_40 = arith.constant 0 : index
    %c0_41 = arith.constant 0 : index
    %60 = vector.load %arg16[%c1_39, %c0_40, %c0_41] : memref<4x8x32xbf16, #tpu.memory_space<vmem>>, vector<1x8x32xbf16>
    %61 = vector.shape_cast %60 : vector<1x8x32xbf16> to vector<8x32xbf16>
    %cst_42 = arith.constant dense<0.000000e+00> : vector<8x32xf32>
    %62 = tpu.matmul %59, %61, %cst_42 {dimension_numbers = #tpu.dot_dimension_numbers<[1], [0], [0], [1], [0, 0, 1, 1], [], []>} : vector<8x8xbf16>, vector<8x32xbf16>, vector<8x32xf32> -> vector<8x32xf32>
    %63 = arith.addf %33, %62 : vector<8x32xf32>
    %c2 = arith.constant 2 : index
    %c0_43 = arith.constant 0 : index
    %c0_44 = arith.constant 0 : index
    %64 = vector.load %arg13[%c2, %c0_43, %c0_44] : memref<4x32x8xbf16, #tpu.memory_space<vmem>>, vector<1x32x8xbf16>
    %65 = vector.shape_cast %64 : vector<1x32x8xbf16> to vector<32x8xbf16>
    %cst_45 = arith.constant dense<0.000000e+00> : vector<8x8xf32>
    %66 = tpu.matmul %4, %65, %cst_45 {dimension_numbers = #tpu.dot_dimension_numbers<[1], [0], [0], [1], [0, 0, 1, 1], [], []>} : vector<8x32xbf16>, vector<32x8xbf16>, vector<8x8xf32> -> vector<8x8xf32>
    %c2_46 = arith.constant 2 : index
    %c0_47 = arith.constant 0 : index
    %c0_48 = arith.constant 0 : index
    %67 = vector.load %arg8[%c2_46, %c0_47, %c0_48] : memref<4x1x8xf32, #tpu.memory_space<vmem>>, vector<1x1x8xf32>
    %68 = vector.shape_cast %67 : vector<1x1x8xf32> to vector<1x8xf32>
    %69 = vector.broadcast %68 : vector<1x8xf32> to vector<8x8xf32>
    %70 = arith.addf %66, %69 : vector<8x8xf32>
    %71 = arith.truncf %70 : vector<8x8xf32> to vector<8x8xbf16>
    %c2_49 = arith.constant 2 : index
    %c0_50 = arith.constant 0 : index
    %c0_51 = arith.constant 0 : index
    %72 = vector.load %arg17[%c2_49, %c0_50, %c0_51] : memref<4x8x8xbf16, #tpu.memory_space<vmem>>, vector<1x8x8xbf16>
    %73 = vector.shape_cast %72 : vector<1x8x8xbf16> to vector<8x8xbf16>
    %cst_52 = arith.constant dense<0.000000e+00> : vector<8x8xf32>
    %74 = tpu.matmul %71, %73, %cst_52 {dimension_numbers = #tpu.dot_dimension_numbers<[1], [1], [0], [0], [0, 0, 1, 0], [], []>} : vector<8x8xbf16>, vector<8x8xbf16>, vector<8x8xf32> -> vector<8x8xf32>
    %cst_53 = arith.constant dense<0xFF800000> : vector<8xf32>
    %75 = vector.multi_reduction <maximumf>, %74, %cst_53 [1] : vector<8x8xf32> to vector<8xf32>
    %76 = vector.shape_cast %75 : vector<8xf32> to vector<8x1xf32>
    %77 = vector.broadcast %76 : vector<8x1xf32> to vector<8x8xf32>
    %78 = arith.subf %74, %77 : vector<8x8xf32>
    %79 = math.exp %78 : vector<8x8xf32>
    %cst_54 = arith.constant dense<0.000000e+00> : vector<8xf32>
    %80 = vector.multi_reduction <add>, %79, %cst_54 [1] : vector<8x8xf32> to vector<8xf32>
    %81 = vector.shape_cast %80 : vector<8xf32> to vector<8x1xf32>
    %82 = tpu.reciprocal %81 {approx = true} : vector<8x1xf32> -> vector<8x1xf32>
    %83 = vector.broadcast %82 : vector<8x1xf32> to vector<8x8xf32>
    %84 = arith.mulf %79, %83 : vector<8x8xf32>
    %85 = arith.truncf %84 : vector<8x8xf32> to vector<8x8xbf16>
    %c2_55 = arith.constant 2 : index
    %c0_56 = arith.constant 0 : index
    %c0_57 = arith.constant 0 : index
    %86 = vector.load %arg18[%c2_55, %c0_56, %c0_57] : memref<4x8x8xbf16, #tpu.memory_space<vmem>>, vector<1x8x8xbf16>
    %87 = vector.shape_cast %86 : vector<1x8x8xbf16> to vector<8x8xbf16>
    %cst_58 = arith.constant dense<0.000000e+00> : vector<8x8xf32>
    %88 = tpu.matmul %85, %87, %cst_58 {dimension_numbers = #tpu.dot_dimension_numbers<[1], [0], [0], [1], [0, 0, 1, 1], [], []>} : vector<8x8xbf16>, vector<8x8xbf16>, vector<8x8xf32> -> vector<8x8xf32>
    %89 = arith.truncf %88 : vector<8x8xf32> to vector<8x8xbf16>
    %c2_59 = arith.constant 2 : index
    %c0_60 = arith.constant 0 : index
    %c0_61 = arith.constant 0 : index
    %90 = vector.load %arg16[%c2_59, %c0_60, %c0_61] : memref<4x8x32xbf16, #tpu.memory_space<vmem>>, vector<1x8x32xbf16>
    %91 = vector.shape_cast %90 : vector<1x8x32xbf16> to vector<8x32xbf16>
    %cst_62 = arith.constant dense<0.000000e+00> : vector<8x32xf32>
    %92 = tpu.matmul %89, %91, %cst_62 {dimension_numbers = #tpu.dot_dimension_numbers<[1], [0], [0], [1], [0, 0, 1, 1], [], []>} : vector<8x8xbf16>, vector<8x32xbf16>, vector<8x32xf32> -> vector<8x32xf32>
    %93 = arith.addf %63, %92 : vector<8x32xf32>
    %c3 = arith.constant 3 : index
    %c0_63 = arith.constant 0 : index
    %c0_64 = arith.constant 0 : index
    %94 = vector.load %arg13[%c3, %c0_63, %c0_64] : memref<4x32x8xbf16, #tpu.memory_space<vmem>>, vector<1x32x8xbf16>
    %95 = vector.shape_cast %94 : vector<1x32x8xbf16> to vector<32x8xbf16>
    %cst_65 = arith.constant dense<0.000000e+00> : vector<8x8xf32>
    %96 = tpu.matmul %4, %95, %cst_65 {dimension_numbers = #tpu.dot_dimension_numbers<[1], [0], [0], [1], [0, 0, 1, 1], [], []>} : vector<8x32xbf16>, vector<32x8xbf16>, vector<8x8xf32> -> vector<8x8xf32>
    %c3_66 = arith.constant 3 : index
    %c0_67 = arith.constant 0 : index
    %c0_68 = arith.constant 0 : index
    %97 = vector.load %arg8[%c3_66, %c0_67, %c0_68] : memref<4x1x8xf32, #tpu.memory_space<vmem>>, vector<1x1x8xf32>
    %98 = vector.shape_cast %97 : vector<1x1x8xf32> to vector<1x8xf32>
    %99 = vector.broadcast %98 : vector<1x8xf32> to vector<8x8xf32>
    %100 = arith.addf %96, %99 : vector<8x8xf32>
    %101 = arith.truncf %100 : vector<8x8xf32> to vector<8x8xbf16>
    %c3_69 = arith.constant 3 : index
    %c0_70 = arith.constant 0 : index
    %c0_71 = arith.constant 0 : index
    %102 = vector.load %arg17[%c3_69, %c0_70, %c0_71] : memref<4x8x8xbf16, #tpu.memory_space<vmem>>, vector<1x8x8xbf16>
    %103 = vector.shape_cast %102 : vector<1x8x8xbf16> to vector<8x8xbf16>
    %cst_72 = arith.constant dense<0.000000e+00> : vector<8x8xf32>
    %104 = tpu.matmul %101, %103, %cst_72 {dimension_numbers = #tpu.dot_dimension_numbers<[1], [1], [0], [0], [0, 0, 1, 0], [], []>} : vector<8x8xbf16>, vector<8x8xbf16>, vector<8x8xf32> -> vector<8x8xf32>
    %cst_73 = arith.constant dense<0xFF800000> : vector<8xf32>
    %105 = vector.multi_reduction <maximumf>, %104, %cst_73 [1] : vector<8x8xf32> to vector<8xf32>
    %106 = vector.shape_cast %105 : vector<8xf32> to vector<8x1xf32>
    %107 = vector.broadcast %106 : vector<8x1xf32> to vector<8x8xf32>
    %108 = arith.subf %104, %107 : vector<8x8xf32>
    %109 = math.exp %108 : vector<8x8xf32>
    %cst_74 = arith.constant dense<0.000000e+00> : vector<8xf32>
    %110 = vector.multi_reduction <add>, %109, %cst_74 [1] : vector<8x8xf32> to vector<8xf32>
    %111 = vector.shape_cast %110 : vector<8xf32> to vector<8x1xf32>
    %112 = tpu.reciprocal %111 {approx = true} : vector<8x1xf32> -> vector<8x1xf32>
    %113 = vector.broadcast %112 : vector<8x1xf32> to vector<8x8xf32>
    %114 = arith.mulf %109, %113 : vector<8x8xf32>
    %115 = arith.truncf %114 : vector<8x8xf32> to vector<8x8xbf16>
    %c3_75 = arith.constant 3 : index
    %c0_76 = arith.constant 0 : index
    %c0_77 = arith.constant 0 : index
    %116 = vector.load %arg18[%c3_75, %c0_76, %c0_77] : memref<4x8x8xbf16, #tpu.memory_space<vmem>>, vector<1x8x8xbf16>
    %117 = vector.shape_cast %116 : vector<1x8x8xbf16> to vector<8x8xbf16>
    %cst_78 = arith.constant dense<0.000000e+00> : vector<8x8xf32>
    %118 = tpu.matmul %115, %117, %cst_78 {dimension_numbers = #tpu.dot_dimension_numbers<[1], [0], [0], [1], [0, 0, 1, 1], [], []>} : vector<8x8xbf16>, vector<8x8xbf16>, vector<8x8xf32> -> vector<8x8xf32>
    %119 = arith.truncf %118 : vector<8x8xf32> to vector<8x8xbf16>
    %c3_79 = arith.constant 3 : index
    %c0_80 = arith.constant 0 : index
    %c0_81 = arith.constant 0 : index
    %120 = vector.load %arg16[%c3_79, %c0_80, %c0_81] : memref<4x8x32xbf16, #tpu.memory_space<vmem>>, vector<1x8x32xbf16>
    %121 = vector.shape_cast %120 : vector<1x8x32xbf16> to vector<8x32xbf16>
    %cst_82 = arith.constant dense<0.000000e+00> : vector<8x32xf32>
    %122 = tpu.matmul %119, %121, %cst_82 {dimension_numbers = #tpu.dot_dimension_numbers<[1], [0], [0], [1], [0, 0, 1, 1], [], []>} : vector<8x8xbf16>, vector<8x32xbf16>, vector<8x32xf32> -> vector<8x32xf32>
    %123 = arith.addf %93, %122 : vector<8x32xf32>
    %c0_83 = arith.constant 0 : index
    %c0_84 = arith.constant 0 : index
    %124 = vector.load %arg11[%c0_83, %c0_84] : memref<1x32xf32, #tpu.memory_space<vmem>>, vector<1x32xf32>
    %125 = vector.broadcast %124 : vector<1x32xf32> to vector<8x32xf32>
    %126 = arith.addf %123, %125 : vector<8x32xf32>
    %c0_85 = arith.constant 0 : index
    %c0_86 = arith.constant 0 : index
    %c0_87 = arith.constant 0 : index
    %127 = vector.load %arg12[%c0_85, %c0_86, %c0_87] : memref<1x8x32xf32, #tpu.memory_space<vmem>>, vector<1x8x32xf32>
    %128 = vector.shape_cast %127 : vector<1x8x32xf32> to vector<8x32xf32>
    %129 = vector.shape_cast %126 : vector<8x32xf32> to vector<1x8x32xf32>
    tpu.vector_store %arg12[%c0_85, %c0_86, %c0_87], %129 {strides = array<i32>} : memref<1x8x32xf32, #tpu.memory_space<vmem>>, vector<1x8x32xf32>,
    return
  }
  func.func @transform_0(%arg0: i32, %arg1: i32) -> (i32, i32, i32) {
    %c0_i32 = arith.constant 0 : i32
    %c0_i32_0 = arith.constant 0 : i32
    return %arg0, %arg1, %c0_i32 : i32, i32, i32
  }
  func.func @transform_1(%arg0: i32, %arg1: i32) -> (i32, i32, i32) {
    %c0_i32 = arith.constant 0 : i32
    %c0_i32_0 = arith.constant 0 : i32
    %c0_i32_1 = arith.constant 0 : i32
    return %arg0, %c0_i32, %c0_i32_0 : i32, i32, i32
  }
  func.func @transform_6(%arg0: i32, %arg1: i32) -> (i32, i32, i32) {
    %c0_i32 = arith.constant 0 : i32
    %c0_i32_0 = arith.constant 0 : i32
    %c0_i32_1 = arith.constant 0 : i32
    %c0_i32_2 = arith.constant 0 : i32
    return %c0_i32, %c0_i32_0, %c0_i32_1 : i32, i32, i32
  }
  func.func @transform_7(%arg0: i32, %arg1: i32) -> (i32, i32, i32) {
    %c0_i32 = arith.constant 0 : i32
    %c0_i32_0 = arith.constant 0 : i32
    %c0_i32_1 = arith.constant 0 : i32
    %c0_i32_2 = arith.constant 0 : i32
    return %c0_i32, %c0_i32_0, %c0_i32_1 : i32, i32, i32
  }
  func.func @transform_8(%arg0: i32, %arg1: i32) -> (i32, i32, i32) {
    %c0_i32 = arith.constant 0 : i32
    %c0_i32_0 = arith.constant 0 : i32
    %c0_i32_1 = arith.constant 0 : i32
    %c0_i32_2 = arith.constant 0 : i32
    return %c0_i32, %c0_i32_0, %c0_i32_1 : i32, i32, i32
  }
  func.func @transform_9(%arg0: i32, %arg1: i32) -> (i32, i32) {
    %c0_i32 = arith.constant 0 : i32
    %c0_i32_0 = arith.constant 0 : i32
    %c0_i32_1 = arith.constant 0 : i32
    return %c0_i32, %c0_i32_0 : i32, i32
  }
  func.func @transform_10(%arg0: i32, %arg1: i32) -> (i32, i32, i32) {
    %c0_i32 = arith.constant 0 : i32
    %c0_i32_0 = arith.constant 0 : i32
    return %arg0, %arg1, %c0_i32 : i32, i32, i32
  }
}

</mosaic_0001>

<bundles_post_ra>
// kernel: tpu_custom_call.1
= control target key start
LH: loop header
LB: loop body
LE: loop exit
PB: predicated region body
PF: predicated region fallthrough
CT: control target
= control target key end

     0   :  { %15 = vsyncpa [#allocation10], 0  ;;  %s3029_s0 = inlined_call_operand.vmem [shape: bf16[2,8,32], index: 0, kind: input, shape index: {}]   ;;  %s3030_s1 = inlined_call_operand.vmem [shape: bf16[2,8,24], index: 1, kind: input, shape index: {}]   ;;  %s3031_s2 = inlined_call_operand.vmem [shape: bf16[4,32,8], index: 2, kind: input, shape index: {}]   ;;  %s3032_s3 = inlined_call_operand.vmem [shape: bf16[4,24,8], index: 3, kind: input, shape index: {}]   ;;  %s3033_s4 = inlined_call_operand.vmem [shape: bf16[4,24,8], index: 4, kind: input, shape index: {}]   ;;  %s3034_s5 = inlined_call_operand.vmem [shape: bf16[4,8,32], index: 5, kind: input, shape index: {}]   ;;  %s3035_s6 = inlined_call_operand.vmem [shape: f32[4,1,8], index: 6, kind: input, shape index: {}]   ;;  %s3036_s7 = inlined_call_operand.vmem [shape: f32[4,1,8], index: 7, kind: input, shape index: {}]   ;;  %s3037_s8 = inlined_call_operand.vmem [shape: f32[4,1,8], index: 8, kind: input, shape index: {}]   ;;  %s3038_s9 = inlined_call_operand.vmem [shape: f32[1,32], index: 9, kind: input, shape index: {}]   ;;  %s3039_s10 = inlined_call_operand.hbm [shape: f32[2,8,32], index: 10, kind: output, shape index: {}]  }
   0x1   :  { %17 = vsyncpa [#allocation10 + $0x1], 0  ;;  %s2604_s13 = smov 0   ;;  %s2606_s14 = smov 0  }
   0x2   :  { %s2608_s15 = smov 0   ;;  %s2610_s16 = smov 0  }
   0x3   :  { %s2612_s17 = smov 0   ;;  %s2614_s18 = smov 0  }
   0x4 LB: > { %3044 = sst [smem:[#allocation20_spill]] %s2532_s15  ;;  %s2063_s19 = sadd.s32 4294967295, %s2544_s18   ;;  %s2544_s18 = sphi %s2614_s18, %s23_s18   ;;  %s2540_s17 = sphi %s2612_s17, %s3054_s17   ;;  %s2536_s16 = sphi %s2610_s16, %s3053_s16   ;;  %s2532_s15 = sphi %s2608_s15, %s3052_s15   ;;  %s2528_s14 = sphi %s2606_s14, %s3056_s14   ;;  %s2524_s13 = sphi %s2604_s13, %s3055_s13  }
   0x5   : > { %3045 = sst [smem:[#allocation21_spill]] %s2540_s17  ;;  %s2064_s20 = sadd.s32 4294967294, %s2544_s18  }
   0x6   : > { %s35_s21 = sadd.s32 1, %s2540_s17  ;;  %s182_s22 = sadd.s32 1, %s2532_s15 }
   0x7   : > { %p37_p0 = scmp.ge.s32.totalorder %s35_s21, 2  ;;  %p192_p1 = scmp.ne.s32.totalorder %s2532_s15, %s2528_s14 }
   0x8   : > { %p193_p2 = scmp.eq.s32.totalorder %s2063_s19, 1  ;;  %p198_p3 = scmp.ne.s32.totalorder %s2528_s14, %s2524_s13 }
   0x9   : > { %s3058_s21 = smov (%p37_p0, %s35_s21), 0  ;;  %p199_p5 = scmp.eq.s32.totalorder %s2064_s20, 1 }
   0xa   : > { %3046 = sst [smem:[#allocation22_spill]] %s3058_s21  ;;  %p2644_p4 = por %p193_p2, %p192_p1 }
   0xb   : > { %s177_s24 = ssub.s32 %s2540_s17, %s3058_s21  ;;  %p2067_p6 = scmp.ge.s32.totalorder %s2544_s18, 1 }
   0xc   : > { %p180_p7 = scmp.eq.s32.totalorder %s177_s24, 0  ;;  %p2651_p8 = por %p199_p5, %p198_p3 }
   0xd   : > { %p246_p9 = scmp.lt.s32.totalorder %s2544_s18, 3 }
   0xe   : > { %s2657_s26 = scalar_select %p180_p7, %s2532_s15, %s182_s22  }
   0xf   : > { %p247_p10 = pnand %p2067_p6, %p246_p9 }
  0x10   : > { %3049 = sst [smem:[#allocation23_spill]] %s2657_s26  ;;  %s3040_s27 = sand.u32 (!%p247_p10), 1, %s2528_s14   ;;  %v2664_v0 = vld [vmem:[%s3031_s2] sm:$0xff] (!%p247_p10)  ;;  %v2669_v1 = vld [vmem:[%s3031_s2 + $0x8] sm:$0xff] (!%p247_p10)  ;;  %v2674_v2 = vld [vmem:[%s3031_s2 + $0x10] sm:$0xff] (!%p247_p10) }
  0x11   : > { %250 = sbr.rel (%p247_p10) target bundleno = 3530 (0xdca), region = 44  ;;  %p282_p11 = scmp.lt.s32.totalorder (!%p247_p10), %s2536_s16, 1  ;;  %v2683_v3 = vld [vmem:[%s3031_s2 + $0x18] sm:$0xff] (!%p247_p10)  ;;  %v2688_v4 = vld [vmem:[%s3031_s2 + $0x20] sm:$0xff] (!%p247_p10)  ;;  %v2693_v5 = vld [vmem:[%s3031_s2 + $0x28] sm:$0xff] (!%p247_p10) }
  0x12   : > { %s2678_s20 = sshll.u32 (!%p247_p10), %s3040_s27, 3  ;;  %v2698_v6 = vld [vmem:[%s3031_s2 + $0x30] sm:$0xff] (!%p247_p10)  ;;  %v2703_v7 = vld [vmem:[%s3031_s2 + $0x38] sm:$0xff] (!%p247_p10) }
  0x13   : > { %s281_s12 = scalar_lea.vmem (!%p247_p10), [#allocation9], %s2678_s20 }
  0x18   : > { %s283_s24 = scalar_select %p282_p11, %s2536_s16, 1 }
  0x1a   : > { %s2069_s21 = sshll.u32 %s283_s24, 2 }
  0x1b   : > { %s2709_s17 = scalar_lea.vmem %s3029_s0, %s2069_s21  ;;  %s2714_s26 = scalar_lea.vmem %s3030_s1, %s2069_s21 }
  0x1c   : > { %353 = vsyncadd [#allocation8], 1024  ;;  %v387_v8 = vld [vmem:[%s3032_s3] sm:$0xff]  ;;  %v389_v9 = vld [vmem:[%s3032_s3 + $0x8] sm:$0xff] }
  0x1d   : > { %388 = vst [vmem:[#allocation3] sm:$0xff] %v387_v8  ;;  %390 = vst [vmem:[#allocation3 + $0x8] sm:$0xff] %v389_v9  ;;  %v391_v10 = vld [vmem:[%s3032_s3 + $0x10] sm:$0xff]  ;;  %v393_v11 = vld [vmem:[%s3032_s3 + $0x18] sm:$0xff] }
  0x1e   : > { %v395_v12 = vld [vmem:[%s3032_s3 + $0x20] sm:$0xff]  ;;  %392 = vst [vmem:[#allocation3 + $0x10] sm:$0xff] %v391_v10  ;;  %394 = vst [vmem:[#allocation3 + $0x18] sm:$0xff] %v393_v11  ;;  %v397_v13 = vld [vmem:[%s3032_s3 + $0x28] sm:$0xff] }
  0x1f   : > { %396 = vst [vmem:[#allocation3 + $0x20] sm:$0xff] %v395_v12  ;;  %398 = vst [vmem:[#allocation3 + $0x28] sm:$0xff] %v397_v13 }
  0x20   : > { %406 = vsyncadd [#allocation8 + $0x1], 768  ;;  %v440_v14 = vld [vmem:[%s3033_s4] sm:$0xff]  ;;  %v442_v15 = vld [vmem:[%s3033_s4 + $0x8] sm:$0xff] }
  0x21   : > { %441 = vst [vmem:[#allocation4] sm:$0xff] %v440_v14  ;;  %443 = vst [vmem:[#allocation4 + $0x8] sm:$0xff] %v442_v15  ;;  %v444_v16 = vld [vmem:[%s3033_s4 + $0x10] sm:$0xff]  ;;  %v446_v17 = vld [vmem:[%s3033_s4 + $0x18] sm:$0xff] }
  0x22   : > { %v448_v18 = vld [vmem:[%s3033_s4 + $0x20] sm:$0xff]  ;;  %445 = vst [vmem:[#allocation4 + $0x10] sm:$0xff] %v444_v16  ;;  %447 = vst [vmem:[#allocation4 + $0x18] sm:$0xff] %v446_v17  ;;  %v450_v19 = vld [vmem:[%s3033_s4 + $0x28] sm:$0xff] }
  0x23   : > { %449 = vst [vmem:[#allocation4 + $0x20] sm:$0xff] %v448_v18  ;;  %451 = vst [vmem:[#allocation4 + $0x28] sm:$0xff] %v450_v19 }
  0x24   : > { %459 = vsyncadd [#allocation8 + $0x2], 768  ;;  %v493_v20 = vld [vmem:[%s3034_s5] sm:$0xff]  ;;  %v495_v21 = vld [vmem:[%s3034_s5 + $0x8] sm:$0xff] }
  0x25   : > { %494 = vst [vmem:[#allocation5] sm:$0xff] %v493_v20  ;;  %496 = vst [vmem:[#allocation5 + $0x8] sm:$0xff] %v495_v21 }
  0x26   : > { %504 = vsyncadd [#allocation8 + $0x3], 256 }
  0x27   : > { %2510 = dma.done.wait [#allocation8], 1024 }
  0x28   : > { %2511 = vsyncadd [#allocation8], 4294966272 }
  0x29   : > { %2512 = dma.done.wait [#allocation8 + $0x1], 768 }
  0x2a   : > { %2513 = vsyncadd [#allocation8 + $0x1], 4294966528 }
  0x2b   : > { %2514 = dma.done.wait [#allocation8 + $0x2], 768 }
  0x2c   : > { %2515 = vsyncadd [#allocation8 + $0x2], 4294966528 }
  0x2d   : > { %2516 = dma.done.wait [#allocation8 + $0x3], 256 }
  0x2e   : > { %2517 = vsyncadd [#allocation8 + $0x3], 4294967040  ;;  %v2546_v22 = vmov 0.0   ;;  %vm2547_vm0 = vmmov 0   ;;  %v2426_v23 = vld [vmem:[#allocation3] sm:$0xff]   ;;  %vm544_vm1 = vcmask 1043456  }
  0x2f   : > { %2201 = vmatprep.subr.bf16.mxu0 %v2546_v22  ;;  %2205 = vmatprep.mubr.msk.bf16.mxu0 %vm2547_vm0, %v2546_v22  ;;  %v2427_v24 = vld [vmem:[#allocation3 + $0x8] ss:$0 sps:$4 sm:$0xff]   ;;  %v2768_v26 = vld [vmem:[%s2714_s26] sm:$0xf]  ;;  %vm540_vm2 = vcmask 195584   ;;  %v2428_v27 = vld [vmem:[#allocation3 + $0xc] sm:$0xff]  }
  0x30   : > { %2209 = vmatprep.subr.bf16.mxu1 %v2546_v22  ;;  %2213 = vmatprep.mubr.msk.bf16.mxu1 %vm2547_vm0, %v2546_v22  ;;  %v546_v25 = vsel %vm544_vm1, %v2427_v24, 0  ;;  %v2429_v28 = vld [vmem:[#allocation3 + $0x14] ss:$0 sps:$4 sm:$0xff]   ;;  %v2435_v30 = vld [vmem:[#allocation4 + $0x8] ss:$0 sps:$4 sm:$0xff]   ;;  %v2436_v33 = vld [vmem:[#allocation4 + $0xc] sm:$0xff]  }
  0x31   : > { %2202 = vmatpush3.bf16.msra.mxu0 %v2426_v23  ;;  %v2434_v29 = vld [vmem:[#allocation4] sm:$0xff]   ;;  %v677_v31 = vsel %vm544_vm1, %v2429_v28, 0  ;;  %v608_v32 = vsel %vm544_vm1, %v2435_v30, 0  ;;  %v2430_v34 = vld [vmem:[#allocation3 + $0x18] sm:$0xff]   ;;  %v2437_v35 = vld [vmem:[#allocation4 + $0x14] ss:$0 sps:$4 sm:$0xff]  }
  0x32   : > { %2203 = vmatprep.subr.bf16.mxu0 %v2546_v22  ;;  %2210 = vmatpush3.bf16.msra.mxu1 %v2434_v29  ;;  %v2431_v36 = vld [vmem:[#allocation3 + $0x20] ss:$0 sps:$4 sm:$0xff]   ;;  %v741_v37 = vsel %vm544_vm1, %v2437_v35, 0  ;;  %v2438_v39 = vld [vmem:[#allocation4 + $0x18] sm:$0xff]   ;;  %v2439_v41 = vld [vmem:[#allocation4 + $0x20] ss:$0 sps:$4 sm:$0xff]  }
  0x33   : > { %2211 = vmatprep.subr.bf16.mxu1 %v2546_v22  ;;  %v811_v38 = vsel %vm544_vm1, %v2431_v36, 0  ;;  %v2432_v40 = vld [vmem:[#allocation3 + $0x24] sm:$0xff]   ;;  %v2433_v42 = vld [vmem:[#allocation3 + $0x2c] ss:$0 sps:$4 sm:$0xff]   ;;  %v875_v43 = vsel %vm544_vm1, %v2439_v41, 0  ;;  %vm1067_vm3 = vcmask 261120  }
  0x34   : > { %v945_v44 = vsel %vm544_vm1, %v2433_v42, 0  ;;  %v2821_v45 = vld [vmem:[%s2709_s17] sm:$0xf]  ;;  %v2440_v46 = vld [vmem:[#allocation4 + $0x24] sm:$0xff]   ;;  %v2441_v47 = vld [vmem:[#allocation4 + $0x2c] ss:$0 sps:$4 sm:$0xff]  }
  0x35   : > { %2204 = vmatpush3.bf16.msra.mxu0 %v546_v25  ;;  %v1009_v48 = vsel %vm544_vm1, %v2441_v47, 0  ;;  %v2071_v49 = vld [vmem:[%s3036_s7] ss:$0 sm:$0xff]  ;;  %vm651_vm4 = vcmask 60416   ;;  %v2080_v57 = vld [vmem:[%s3036_s7 + $0x1] ss:$0 sm:$0xff] }
  0x36   : > { %2217 = vmatprep.subr.bf16.mxu0 %v2546_v22  ;;  %2212 = vmatpush3.bf16.msra.mxu1 %v608_v32  ;;  %v2075_v56 = vld [vmem:[%s3037_s8] ss:$0 sm:$0xff]  ;;  %vm1113_vm5 = vcmask 64512   ;;  %v2085_v14 = vld [vmem:[%s3037_s8 + $0x1] ss:$0 sm:$0xff]  ;;  %s2134_s21 = sshll.u32 %s2536_s16, 7 }
  0x37   : > { %2225 = vmatprep.subr.bf16.mxu1 %v2546_v22  ;;  %v2090_v15 = vld [vmem:[%s3036_s7 + $0x2] ss:$0 sm:$0xff]  ;;  %v2100_v32 = vld [vmem:[%s3036_s7 + $0x3] ss:$0 sm:$0xff]  ;;  %s1921_s11 = sshll.u32 %s281_s12, 4  ;;  %s2977_s27 = scalar_lea.hbm %s3039_s10, %s2134_s21  ;;  %s2979_s11 = int_to_ptr.vmem [resolvable:$true] %s1921_s11 }
  0x38   : > { %2206 = vmatmul.mubr.msk.bf16.vlgmr.msra.gmra.mrb[0].mxu0 %vm540_vm2, %v2768_v26  ;;  %s3050_s16 = sand.u32 1, %s2528_s14   ;;  %s2458_s24 = scalar_lea.vmem %s2979_s11, 128 }
  0x39   : > { %2218 = vmatpush3.bf16.msra.mxu0 %v2428_v27  ;;  %2221 = vmatprep.mubr.msk.bf16.mxu0 %vm2547_vm0, %v2546_v22  ;;  %s1907_s22 = scalar_lea.sflag [#allocation10], %s3050_s16  ;;  %p2459_p12 = scmp.ne.s32.totalorder %s2979_s11, %s2458_s24 }
  0x3a   : > { %2219 = vmatprep.subr.bf16.mxu0 %v2546_v22  ;;  %2214 = vmatmul.mubr.msk.bf16.vlgmr.msra.gmra.mrb[0].mxu1 %vm540_vm2, %v2768_v26  ;;  %s2548_s28 = smov [#allocation9]  }
  0x3b   : > { %2226 = vmatpush3.bf16.msra.mxu1 %v2436_v33  ;;  %2229 = vmatprep.mubr.msk.bf16.mxu1 %vm2547_vm0, %v2546_v22  ;;  %p2460_p13 = pnand %p2459_p12, %p2644_p4  ;;  %s2462_s29 = sshll.u32 %s2548_s28, 4  ;;  %s2463_s29 = int_to_ptr.vmem [resolvable:$false] %s2462_s29 }
  0x3c   : > { %2227 = vmatprep.subr.bf16.mxu1 %v2546_v22  ;;  %s2464_s30 = scalar_lea.vmem %s2463_s29, 256  ;;  %p2465_p1 = scmp.lt.s32.totalorder %s2979_s11, %s2463_s29 }
  0x3d   : > { %2220 = vmatpush3.bf16.msra.mxu0 %v677_v31  ;;  %v2095_v31 = vld [vmem:[%s3037_s8 + $0x2] ss:$0 sm:$0xff]  ;;  %p2461_p0 = pneg %p2460_p13  ;;  %p2466_p2 = scmp.lt.s32.totalorder %s2464_s30, %s2458_s24 }
  0x3e   : > { %2233 = vmatprep.subr.bf16.mxu0 %v2546_v22 }
  0x3f   : > { %2228 = vmatpush3.bf16.msra.mxu1 %v741_v37  ;;  %p2467_p3 = por %p2466_p2, %p2465_p1 }
  0x40   : > { %2222 = vmatmul.mubr.msk.bf16.vlgmr.msra.gmra.mrb[4].mxu0 %vm540_vm2, %v2768_v26  ;;  %2241 = vmatprep.subr.bf16.mxu1 %v2546_v22 }
  0x41   : > { %2234 = vmatpush3.bf16.msra.mxu0 %v2430_v34  ;;  %2237 = vmatprep.mubr.msk.bf16.mxu0 %vm2547_vm0, %v2546_v22  ;;  %p2468_p5 = pnand %p2467_p3, %p2461_p0 }
  0x42   : > { %2235 = vmatprep.subr.bf16.mxu0 %v2546_v22  ;;  %2230 = vmatmul.mubr.msk.bf16.vlgmr.msra.gmra.mrb[4].mxu1 %vm540_vm2, %v2768_v26 }
  0x43   : > { %2242 = vmatpush3.bf16.msra.mxu1 %v2438_v39  ;;  %2245 = vmatprep.mubr.msk.bf16.mxu1 %vm2547_vm0, %v2546_v22 }
  0x44   : > { %2243 = vmatprep.subr.bf16.mxu1 %v2546_v22 }
  0x45   : > { %2236 = vmatpush3.bf16.msra.mxu0 %v811_v38 }
  0x46   : > { %2249 = vmatprep.subr.bf16.mxu0 %v2546_v22 }
  0x47   : > { %2244 = vmatpush3.bf16.msra.mxu1 %v875_v43 }
  0x48   : > { %2238 = vmatmul.mubr.msk.bf16.vlgmr.msra.gmra.mrb[8].mxu0 %vm540_vm2, %v2768_v26  ;;  %2257 = vmatprep.subr.bf16.mxu1 %v2546_v22 }
  0x49   : > { %2250 = vmatpush3.bf16.msra.mxu0 %v2432_v40  ;;  %2253 = vmatprep.mubr.msk.bf16.mxu0 %vm2547_vm0, %v2546_v22 }
  0x4a   : > { %2251 = vmatprep.subr.bf16.mxu0 %v2546_v22  ;;  %2246 = vmatmul.mubr.msk.bf16.vlgmr.msra.gmra.mrb[8].mxu1 %vm540_vm2, %v2768_v26 }
  0x4b   : > { %2261 = vmatprep.mubr.msk.bf16.mxu1 %vm2547_vm0, %v2546_v22  ;;  %2258 = vmatpush3.bf16.msra.mxu1 %v2440_v46  ;;  %v2109_v46 = vld [vmem:[%s3035_s6] ss:$0 sm:$0xff] }
  0x4c   : > { %2259 = vmatprep.subr.bf16.mxu1 %v2546_v22 }
  0x4d   : > { %2252 = vmatpush3.bf16.msra.mxu0 %v945_v44 }
  0x4e   : > { %2265 = vmatprep.subr.bf16.mxu0 %v2546_v22 }
  0x4f   : > { %2260 = vmatpush3.bf16.msra.mxu1 %v1009_v48 }
  0x50   : > { %2254 = vmatmul.mubr.msk.bf16.vlgmr.msra.gmra.mrb[12].mxu0 %vm540_vm2, %v2768_v26  ;;  %2273 = vmatprep.subr.bf16.mxu1 %v2546_v22 }
  0x51   : > { %2266 = vmatpush3.bf16.msra.mxu0 %v2664_v0  ;;  %2269 = vmatprep.mubr.msk.bf16.mxu0 %vm2547_vm0, %v2546_v22 }
  0x52   : > { %2267 = vmatprep.subr.bf16.mxu0 %v2546_v22  ;;  %2262 = vmatmul.mubr.msk.bf16.vlgmr.msra.gmra.mrb[12].mxu1 %vm540_vm2, %v2768_v26 }
  0x53   : > { %2275 = vmatprep.mubr.msk.bf16.mxu1 %vm2547_vm0, %v2546_v22 }
  0x55   : > { %2268 = vmatpush3.bf16.msra.mxu0 %v2669_v1 }
  0x56   : > { %2279 = vmatprep.subr.bf16.mxu0 %v2546_v22 }
  0x58   : > { %2270 = vmatmul.mubr.msk.bf16.vlgmr.msra.gmra.mrb[16].mxu0 %vm1067_vm3, %v2821_v45 }
  0x59   : > { %2281 = vmatprep.mubr.msk.bf16.mxu0 %vm2547_vm0, %v2546_v22 }
 0x10b   : > { %v582_v50 = vpop.f32.mrb[0].mxu0 }
 0x10c   : > { %v583_v51 = vadd.f32 %v2071_v49, %v582_v50  ;;  %v2207_v52 = vpop.f32.mrb[1].mxu0 }
 0x10d   : > { %v585_v53 = vpop.f32.mrb[2].mxu0  ;;  %v644_v58 = vpop.f32.mrb[0].mxu1 }
 0x10e   : > { %v650_v54 = vpack.c.bf16 %v583_v51, %v583_v51  ;;  %v2208_v55 = vpop.f32.mrb[3].mxu0  ;;  %v645_v60 = vadd.f32 %v2075_v56, %v644_v58  ;;  %v2215_v61 = vpop.f32.mrb[1].mxu1 }
 0x10f   : > { %v647_v0 = vpop.f32.mrb[2].mxu1 }
 0x110   : > { %652 = vst.msk [vmem:[#allocation6] sm:$0xf] %vm651_vm4, %v650_v54  ;;  %v653_v8 = vpack.c.bf16 %v645_v60, %v645_v60  ;;  %v2216_v9 = vpop.f32.mrb[3].mxu1 }
 0x112   : > { %654 = vst.msk [vmem:[#allocation7] sm:$0xf] %vm651_vm4, %v653_v8 }
 0x113   : > { %v713_v59 = vpop.f32.mrb[4].mxu0 }
 0x114   : > { %v714_v62 = vadd.f32 %v2080_v57, %v713_v59  ;;  %v2223_v63 = vpop.f32.mrb[5].mxu0 }
 0x115   : > { %v716_v1 = vpop.f32.mrb[6].mxu0  ;;  %v777_v16 = vpop.f32.mrb[4].mxu1 }
 0x116   : > { %v783_v10 = vpack.c.bf16 %v714_v62, %v714_v62  ;;  %v2224_v11 = vpop.f32.mrb[7].mxu0  ;;  %v778_v18 = vadd.f32 %v2085_v14, %v777_v16  ;;  %v2231_v19 = vpop.f32.mrb[5].mxu1 }
 0x117   : > { %v1112_v12 = vld [vmem:[#allocation6] sm:$0xf]  ;;  %v780_v23 = vpop.f32.mrb[6].mxu1 }
 0x118   : > { %785 = vst.msk [vmem:[#allocation6 + $0x4] sm:$0xf] %vm651_vm4, %v783_v10  ;;  %v1118_v13 = vsel %vm1113_vm5, %v1112_v12, 0  ;;  %v786_v25 = vpack.c.bf16 %v778_v18, %v778_v18  ;;  %v2232_v26 = vpop.f32.mrb[7].mxu1 }
 0x119   : > { %2274 = vmatpush3.bf16.xpose.msra.mxu1 %v1118_v13  ;;  %v1172_v29 = vld [vmem:[#allocation7] sm:$0xf] }
 0x11a   : > { %2285 = vmatprep.subr.bf16.mxu1 %v2546_v22  ;;  %788 = vst.msk [vmem:[#allocation7 + $0x4] sm:$0xf] %vm651_vm4, %v786_v25  ;;  %v1178_v30 = vsel %vm544_vm1, %v1172_v29, 0 }
 0x11b   : > { %v847_v17 = vpop.f32.mrb[8].mxu0  ;;  %2280 = vmatpush3.bf16.msra.mxu0 %v1178_v30 }
 0x11c   : > { %v848_v20 = vadd.f32 %v2090_v15, %v847_v17  ;;  %v2239_v21 = vpop.f32.mrb[9].mxu0  ;;  %2293 = vmatprep.subr.bf16.mxu0 %v2546_v22 }
 0x11d   : > { %v850_v24 = vpop.f32.mrb[10].mxu0  ;;  %v911_v33 = vpop.f32.mrb[8].mxu1 }
 0x11e   : > { %v917_v27 = vpack.c.bf16 %v848_v20, %v848_v20  ;;  %v2240_v28 = vpop.f32.mrb[11].mxu0  ;;  %v912_v35 = vadd.f32 %v2095_v31, %v911_v33  ;;  %v2247_v36 = vpop.f32.mrb[9].mxu1  ;;  %v2114_v20 = vld [vmem:[%s3035_s6 + $0x1] ss:$0 sm:$0xff] }
 0x11f   : > { %v914_v39 = vpop.f32.mrb[10].mxu1  ;;  %v1275_v19 = vld [vmem:[#allocation6 + $0x4] sm:$0xf] }
 0x120   : > { %919 = vst.msk [vmem:[#allocation6 + $0x8] sm:$0xf] %vm651_vm4, %v917_v27  ;;  %v920_v41 = vpack.c.bf16 %v912_v35, %v912_v35  ;;  %v2248_v42 = vpop.f32.mrb[11].mxu1  ;;  %v1280_v23 = vsel %vm1113_vm5, %v1275_v19, 0 }
 0x121   : > { %v1335_v53 = vld [vmem:[#allocation7 + $0x4] sm:$0xf] }
 0x122   : > { %922 = vst.msk [vmem:[#allocation7 + $0x8] sm:$0xf] %vm651_vm4, %v920_v41  ;;  %v1340_v54 = vsel %vm544_vm1, %v1335_v53, 0 }
 0x123   : > { %v981_v34 = vpop.f32.mrb[12].mxu0 }
 0x124   : > { %v982_v37 = vadd.f32 %v2100_v32, %v981_v34  ;;  %v2255_v38 = vpop.f32.mrb[13].mxu0 }
 0x125   : > { %v984_v40 = vpop.f32.mrb[14].mxu0  ;;  %v1045_v55 = vpop.f32.mrb[12].mxu1 }
 0x126   : > { %v1051_v43 = vpack.c.bf16 %v982_v37, %v982_v37  ;;  %v2256_v44 = vpop.f32.mrb[15].mxu0  ;;  %v1384_v40 = vld [vmem:[#allocation5 + $0x4] sm:$0xf] }
 0x127   : > { %v1389_v41 = vsel %vm544_vm1, %v1384_v40, 0  ;;  %v1221_v44 = vld [vmem:[#allocation5] sm:$0xf] }
 0x128   : > { %1053 = vst.msk [vmem:[#allocation6 + $0xc] sm:$0xf] %vm651_vm4, %v1051_v43 }
 0x12b   : > { %v1105_v47 = vpop.f32.mrb[16].mxu0 }
 0x12c   : > { %v1106_v48 = vadd.f32 %v2109_v46, %v1105_v47  ;;  %v2271_v49 = vpop.f32.mrb[17].mxu0 }
 0x12d   : > { %v1108_v50 = vpop.f32.mrb[18].mxu0 }
 0x12e   : > { %v1111_v51 = vpack.c.bf16 %v1106_v48, %v1106_v48  ;;  %v2272_v52 = vpop.f32.mrb[19].mxu0  ;;  %v1435_v48 = vsel %vm544_vm1, %v1221_v44, 0  ;;  %v1530_v50 = vld [vmem:[#allocation6 + $0x8] sm:$0xf] }
 0x130   : > { %2276 = vmatmul.mubr.msk.bf16.vlgmr.msra.gmra.mrb[16].mxu1 %vm1113_vm5, %v1111_v51  ;;  %v1535_v51 = vsel %vm1113_vm5, %v1530_v50, 0 }
 0x131   : > { %2286 = vmatpush3.bf16.msra.mxu1 %v2674_v2  ;;  %2289 = vmatprep.mubr.msk.bf16.mxu1 %vm2547_vm0, %v2546_v22  ;;  %v2105_v2 = vld [vmem:[%s3037_s8 + $0x3] ss:$0 sm:$0xff] }
 0x132   : > { %2287 = vmatprep.subr.bf16.mxu1 %v2546_v22  ;;  %v1046_v56 = vadd.f32 %v2105_v2, %v1045_v55 }
 0x134   : > { %v1054_v58 = vpack.c.bf16 %v1046_v56, %v1046_v56 }
 0x135   : > { %2288 = vmatpush3.bf16.msra.mxu1 %v2683_v3  ;;  %v2263_v3 = vpop.f32.mrb[13].mxu1 }
 0x136   : > { %2299 = vmatprep.subr.bf16.mxu1 %v2546_v22  ;;  %v1048_v57 = vpop.f32.mrb[14].mxu1  ;;  %1056 = vst.msk [vmem:[#allocation7 + $0xc] sm:$0xf] %vm651_vm4, %v1054_v58  ;;  %v1590_v3 = vld [vmem:[#allocation7 + $0x8] sm:$0xf] }
 0x137   : > { %v2264_v59 = vpop.f32.mrb[15].mxu1 }
 0x138   : > { %2290 = vmatmul.mubr.msk.bf16.vlgmr.msra.gmra.mrb[20].mxu1 %vm1067_vm3, %v2821_v45 }
 0x139   : > { %2300 = vmatpush3.bf16.msra.mxu1 %v1340_v54  ;;  %2301 = vmatprep.mubr.msk.bf16.mxu1 %vm2547_vm0, %v2546_v22 }
 0x13a   : > { %2311 = vmatprep.subr.bf16.mxu1 %v2546_v22 }
 0x203   : > { %v1154_v60 = vpop.f32.mrb[16].mxu1 }
 0x204   : > { %v2277_v61 = vpop.f32.mrb[17].mxu1  ;;  %v1160_v62 = vsel %vm1113_vm5, %v1154_v60, -inf }
 0x205   : > { %1161 = vmax.xlane.f32.xlu0 %v1160_v62  ;;  %v1157_v63 = vpop.f32.mrb[18].mxu1 }
 0x206   : > { %v2278_v0 = vpop.f32.mrb[19].mxu1 }
 0x207   : > { %v2121_v0 = vld [vmem:[%s3035_s6 + $0x2] ss:$0 sm:$0xff] }
 0x20b   : > { %v1267_v12 = vpop.f32.mrb[20].mxu1 }
 0x20c   : > { %v2291_v13 = vpop.f32.mrb[21].mxu1  ;;  %v1268_v24 = vadd.f32 %v2114_v20, %v1267_v12 }
 0x20d   : > { %v1270_v14 = vpop.f32.mrb[22].mxu1 }
 0x20e   : > { %v2292_v15 = vpop.f32.mrb[23].mxu1  ;;  %v1273_v25 = vpack.c.bf16 %v1268_v24, %v1268_v24  ;;  %v1639_v24 = vld [vmem:[#allocation5 + $0x8] sm:$0xf] }
 0x292   : > { %v1162_v1 = vpop.xlane.xlu0 %1161 }
 0x293   : > { %v1163_v8 = vsub.f32 %v1154_v60, %v1162_v1  ;;  %v1595_v60 = vsel %vm544_vm1, %v1590_v3, 0  ;;  %v1849_v3 = vld [vmem:[#allocation5 + $0xc] sm:$0xf] }
 0x295   : > { %v1164_v9 = vmul.f32 1.442695, %v1163_v8 }
 0x297   : > { %2442 = vpow2.f32 %v1164_v9 }
 0x2a1   : > { %v2443_v10 = vpop.eup %2442 }
 0x2a2   : > { %v1166_v11 = vsel %vm1113_vm5, %v2443_v10, 0.0 }
 0x2a3   : > { %1167 = vadd.xlane.f32.xlu0 %v1166_v11 }
 0x330   : > { %v1168_v16 = vpop.xlane.xlu0 %1167 }
 0x331   : > { %2444 = vrcp.f32 %v1168_v16 }
 0x33b   : > { %v2445_v17 = vpop.eup %2444 }
 0x33c   : > { %v1170_v18 = vmul.f32 %v2445_v17, %v2443_v10 }
 0x33e   : > { %v1171_v21 = vpack.c.bf16 %v1170_v18, %v1170_v18 }
 0x340   : > { %2282 = vmatmul.mubr.msk.bf16.vlgmr.msra.gmra.mrb[20].mxu0 %vm1113_vm5, %v1171_v21 }
 0x341   : > { %2294 = vmatpush3.bf16.xpose.msra.mxu0 %v1280_v23  ;;  %2295 = vmatprep.mubr.msk.bf16.mxu0 %vm2547_vm0, %v2546_v22 }
 0x342   : > { %2305 = vmatprep.subr.bf16.mxu0 %v2546_v22 }
 0x348   : > { %2296 = vmatmul.mubr.msk.bf16.vlgmr.msra.gmra.mrb[24].mxu0 %vm1113_vm5, %v1273_v25  ;;  %v1644_v25 = vsel %vm544_vm1, %v1639_v24, 0 }
 0x349   : > { %2307 = vmatprep.mubr.msk.bf16.mxu0 %vm2547_vm0, %v2546_v22  ;;  %2306 = vmatpush3.bf16.msra.mxu0 %v1389_v41 }
 0x34a   : > { %2317 = vmatprep.subr.bf16.mxu0 %v2546_v22 }
 0x413   : > { %v1214_v26 = vpop.f32.mrb[20].mxu0 }
 0x414   : > { %v2283_v27 = vpop.f32.mrb[21].mxu0  ;;  %v1220_v49 = vpack.c.bf16 %v1214_v26, %v1214_v26 }
 0x415   : > { %v1217_v28 = vpop.f32.mrb[22].mxu0 }
 0x416   : > { %v2284_v29 = vpop.f32.mrb[23].mxu0 }
 0x41b   : > { %v1316_v30 = vpop.f32.mrb[24].mxu0 }
 0x41c   : > { %v2297_v31 = vpop.f32.mrb[25].mxu0  ;;  %v1322_v32 = vsel %vm1113_vm5, %v1316_v30, -inf }
 0x41d   : > { %1323 = vmax.xlane.f32.xlu1 %v1322_v32  ;;  %v1319_v33 = vpop.f32.mrb[26].mxu0  ;;  %v1740_v32 = vld [vmem:[#allocation6 + $0xc] sm:$0xf] }
 0x41e   : > { %v2298_v34 = vpop.f32.mrb[27].mxu0 }
 0x4aa   : > { %v1324_v35 = vpop.xlane.xlu1 %1323 }
 0x4ab   : > { %v1325_v36 = vsub.f32 %v1316_v30, %v1324_v35  ;;  %v1800_v30 = vld [vmem:[#allocation7 + $0xc] sm:$0xf] }
 0x4ac   : > { %v1805_v31 = vsel %vm544_vm1, %v1800_v30, 0 }
 0x4ad   : > { %v1326_v37 = vmul.f32 1.442695, %v1325_v36 }
 0x4af   : > { %2446 = vpow2.f32 %v1326_v37 }
 0x4b9   : > { %v2447_v38 = vpop.eup %2446 }
 0x4ba   : > { %v1328_v39 = vsel %vm1113_vm5, %v2447_v38, 0.0 }
 0x4bb   : > { %1329 = vadd.xlane.f32.xlu1 %v1328_v39 }
 0x548   : > { %v1330_v42 = vpop.xlane.xlu1 %1329 }
 0x549   : > { %2448 = vrcp.f32 %v1330_v42 }
 0x553   : > { %v2449_v43 = vpop.eup %2448 }
 0x554   : > { %v1332_v46 = vmul.f32 %v2449_v43, %v2447_v38 }
 0x556   : > { %v1333_v47 = vpack.c.bf16 %v1332_v46, %v1332_v46 }
 0x558   : > { %2302 = vmatmul.mubr.msk.bf16.vlgmr.msra.gmra.mrb[24].mxu1 %vm1113_vm5, %v1333_v47 }
 0x559   : > { %2312 = vmatpush3.bf16.msra.mxu1 %v1435_v48  ;;  %2313 = vmatprep.mubr.msk.bf16.mxu1 %vm2547_vm0, %v2546_v22 }
 0x55a   : > { %2325 = vmatprep.subr.bf16.mxu1 %v2546_v22 }
 0x560   : > { %2314 = vmatmul.mubr.msk.bf16.vlgmr.msra.gmra.mrb[28].mxu1 %vm1113_vm5, %v1220_v49 }
 0x561   : > { %2327 = vmatprep.mubr.msk.bf16.mxu1 %vm2547_vm0, %v2546_v22 }
 0x562   : > { %2326 = vmatpush3.bf16.xpose.msra.mxu1 %v1535_v51 }
 0x563   : > { %2337 = vmatprep.subr.bf16.mxu1 %v2546_v22 }
 0x62b   : > { %v1376_v52 = vpop.f32.mrb[24].mxu1 }
 0x62c   : > { %v1382_v53 = vpack.c.bf16 %v1376_v52, %v1376_v52  ;;  %v2303_v54 = vpop.f32.mrb[25].mxu1 }
 0x62d   : > { %v1379_v2 = vpop.f32.mrb[26].mxu1 }
 0x62e   : > { %v2304_v55 = vpop.f32.mrb[27].mxu1  ;;  %2308 = vmatmul.mubr.msk.bf16.vlgmr.msra.gmra.mrb[28].mxu0 %vm1113_vm5, %v1382_v53 }
 0x62f   : > { %2318 = vmatpush3.bf16.msra.mxu0 %v2688_v4  ;;  %2321 = vmatprep.mubr.msk.bf16.mxu0 %vm2547_vm0, %v2546_v22 }
 0x630   : > { %2319 = vmatprep.subr.bf16.mxu0 %v2546_v22 }
 0x633   : > { %2320 = vmatpush3.bf16.msra.mxu0 %v2693_v5  ;;  %v1471_v56 = vpop.f32.mrb[28].mxu1 }
 0x634   : > { %v2315_v57 = vpop.f32.mrb[29].mxu1  ;;  %2331 = vmatprep.subr.bf16.mxu0 %v2546_v22 }
 0x635   : > { %v1474_v58 = vpop.f32.mrb[30].mxu1  ;;  %v1854_v57 = vsel %vm544_vm1, %v1849_v3, 0 }
 0x636   : > { %v2316_v59 = vpop.f32.mrb[31].mxu1  ;;  %2322 = vmatmul.mubr.msk.bf16.vlgmr.msra.gmra.mrb[32].mxu0 %vm1067_vm3, %v2821_v45 }
 0x637   : > { %2332 = vmatpush3.bf16.msra.mxu0 %v1595_v60  ;;  %2333 = vmatprep.mubr.msk.bf16.mxu0 %vm2547_vm0, %v2546_v22 }
 0x638   : > { %2343 = vmatprep.subr.bf16.mxu0 %v2546_v22 }
 0x701   : > { %v1425_v4 = vpop.f32.mrb[28].mxu0 }
 0x702   : > { %v2927_v5 = vadd.f32 %v1471_v56, %v1425_v4  ;;  %v2309_v61 = vpop.f32.mrb[29].mxu0 }
 0x703   : > { %v1428_v62 = vpop.f32.mrb[30].mxu0 }
 0x704   : > { %v2310_v63 = vpop.f32.mrb[31].mxu0 }
 0x709   : > { %v1522_v1 = vpop.f32.mrb[32].mxu0 }
 0x70a   : > { %v1523_v8 = vadd.f32 %v2121_v0, %v1522_v1  ;;  %v2323_v9 = vpop.f32.mrb[33].mxu0 }
 0x70b   : > { %v1525_v10 = vpop.f32.mrb[34].mxu0 }
 0x70c   : > { %v1528_v11 = vpack.c.bf16 %v1523_v8, %v1523_v8  ;;  %v2324_v12 = vpop.f32.mrb[35].mxu0  ;;  %v2132_v8 = vld [vmem:[%s3038_s9] ss:$0 sm:$0xff] }
 0x70e   : > { %2328 = vmatmul.mubr.msk.bf16.vlgmr.msra.gmra.mrb[32].mxu1 %vm1113_vm5, %v1528_v11 }
 0x70f   : > { %2339 = vmatprep.mubr.msk.bf16.mxu1 %vm2547_vm0, %v2546_v22  ;;  %2338 = vmatpush3.bf16.msra.mxu1 %v1644_v25 }
 0x710   : > { %2351 = vmatprep.subr.bf16.mxu1 %v2546_v22 }
 0x7e1   : > { %v1571_v13 = vpop.f32.mrb[32].mxu1 }
 0x7e2   : > { %v2329_v14 = vpop.f32.mrb[33].mxu1  ;;  %v1577_v15 = vsel %vm1113_vm5, %v1571_v13, -inf }
 0x7e3   : > { %1578 = vmax.xlane.f32.xlu0 %v1577_v15  ;;  %v1574_v16 = vpop.f32.mrb[34].mxu1 }
 0x7e4   : > { %v2330_v17 = vpop.f32.mrb[35].mxu1 }
 0x870   : > { %v1579_v18 = vpop.xlane.xlu0 %1578 }
 0x871   : > { %v1580_v19 = vsub.f32 %v1571_v13, %v1579_v18 }
 0x873   : > { %v1581_v20 = vmul.f32 1.442695, %v1580_v19 }
 0x875   : > { %2450 = vpow2.f32 %v1581_v20 }
 0x87f   : > { %v2451_v21 = vpop.eup %2450 }
 0x880   : > { %v1583_v23 = vsel %vm1113_vm5, %v2451_v21, 0.0 }
 0x881   : > { %1584 = vadd.xlane.f32.xlu1 %v1583_v23 }
 0x90e   : > { %v1585_v26 = vpop.xlane.xlu1 %1584 }
 0x90f   : > { %2452 = vrcp.f32 %v1585_v26 }
 0x919   : > { %v2453_v27 = vpop.eup %2452 }
 0x91a   : > { %v1587_v28 = vmul.f32 %v2453_v27, %v2451_v21 }
 0x91c   : > { %v1588_v29 = vpack.c.bf16 %v1587_v28, %v1587_v28 }
 0x91e   : > { %2334 = vmatmul.mubr.msk.bf16.vlgmr.msra.gmra.mrb[36].mxu0 %vm1113_vm5, %v1588_v29 }
 0x91f   : > { %2344 = vmatpush3.bf16.msra.mxu0 %v2698_v6  ;;  %2347 = vmatprep.mubr.msk.bf16.mxu0 %vm2547_vm0, %v2546_v22 }
 0x920   : > { %2345 = vmatprep.subr.bf16.mxu0 %v2546_v22 }
 0x923   : > { %2346 = vmatpush3.bf16.msra.mxu0 %v2703_v7  ;;  %v1745_v7 = vsel %vm1113_vm5, %v1740_v32, 0 }
 0x924   : > { %2357 = vmatprep.subr.bf16.mxu0 %v2546_v22 }
 0x926   : > { %2348 = vmatmul.mubr.msk.bf16.vlgmr.msra.gmra.mrb[40].mxu0 %vm1067_vm3, %v2821_v45  ;;  %v2127_v45 = vld [vmem:[%s3035_s6 + $0x3] ss:$0 sm:$0xff] }
 0x927   : > { %2358 = vmatpush3.bf16.msra.mxu0 %v1805_v31  ;;  %2359 = vmatprep.mubr.msk.bf16.mxu0 %vm2547_vm0, %v2546_v22 }
 0x9f1   : > { %v1631_v6 = vpop.f32.mrb[36].mxu0 }
 0x9f2   : > { %v1637_v33 = vpack.c.bf16 %v1631_v6, %v1631_v6  ;;  %v2335_v34 = vpop.f32.mrb[37].mxu0 }
 0x9f3   : > { %v1634_v35 = vpop.f32.mrb[38].mxu0 }
 0x9f4   : > { %v2336_v36 = vpop.f32.mrb[39].mxu0  ;;  %2340 = vmatmul.mubr.msk.bf16.vlgmr.msra.gmra.mrb[36].mxu1 %vm1113_vm5, %v1637_v33 }
 0x9f5   : > { %2352 = vmatpush3.bf16.xpose.msra.mxu1 %v1745_v7  ;;  %2353 = vmatprep.mubr.msk.bf16.mxu1 %vm2547_vm0, %v2546_v22 }
 0x9f6   : > { %2363 = vmatprep.subr.bf16.mxu1 %v2546_v22 }
 0x9f9   : > { %v1732_v37 = vpop.f32.mrb[40].mxu0 }
 0x9fa   : > { %v1733_v38 = vadd.f32 %v2127_v45, %v1732_v37  ;;  %v2349_v39 = vpop.f32.mrb[41].mxu0 }
 0x9fb   : > { %v1735_v40 = vpop.f32.mrb[42].mxu0 }
 0x9fc   : > { %v1738_v41 = vpack.c.bf16 %v1733_v38, %v1733_v38  ;;  %v2350_v42 = vpop.f32.mrb[43].mxu0 }
 0x9fe   : > { %2354 = vmatmul.mubr.msk.bf16.vlgmr.msra.gmra.mrb[40].mxu1 %vm1113_vm5, %v1738_v41 }
 0x9ff   : > { %2365 = vmatprep.mubr.msk.bf16.mxu1 %vm2547_vm0, %v2546_v22  ;;  %2364 = vmatpush3.bf16.msra.mxu1 %v1854_v57 }
 0xac7   : > { %v1680_v43 = vpop.f32.mrb[36].mxu1 }
 0xac8   : > { %v1686_v44 = vadd.f32 %v1680_v43, %v2927_v5  ;;  %v2341_v46 = vpop.f32.mrb[37].mxu1 }
 0xac9   : > { %v1683_v47 = vpop.f32.mrb[38].mxu1 }
 0xaca   : > { %v2342_v48 = vpop.f32.mrb[39].mxu1 }
 0xad1   : > { %v1781_v49 = vpop.f32.mrb[40].mxu1 }
 0xad2   : > { %v2355_v50 = vpop.f32.mrb[41].mxu1  ;;  %v1787_v51 = vsel %vm1113_vm5, %v1781_v49, -inf }
 0xad3   : > { %1788 = vmax.xlane.f32.xlu0 %v1787_v51  ;;  %v1784_v52 = vpop.f32.mrb[42].mxu1 }
 0xad4   : > { %v2356_v53 = vpop.f32.mrb[43].mxu1 }
 0xb60   : > { %v1789_v54 = vpop.xlane.xlu0 %1788 }
 0xb61   : > { %v1790_v2 = vsub.f32 %v1781_v49, %v1789_v54 }
 0xb63   : > { %v1791_v55 = vmul.f32 1.442695, %v1790_v2 }
 0xb65   : > { %2454 = vpow2.f32 %v1791_v55 }
 0xb6f   : > { %v2455_v56 = vpop.eup %2454 }
 0xb70   : > { %v1793_v22 = vsel %vm1113_vm5, %v2455_v56, 0.0 }
 0xb71   : > { %1794 = vadd.xlane.f32.xlu1 %v1793_v22 }
 0xbfe   : > { %v1795_v58 = vpop.xlane.xlu1 %1794 }
 0xbff   : > { %2456 = vrcp.f32 %v1795_v58 }
 0xc09   : > { %v2457_v59 = vpop.eup %2456 }
 0xc0a   : > { %v1797_v60 = vmul.f32 %v2457_v59, %v2455_v56 }
 0xc0c   : > { %v1798_v4 = vpack.c.bf16 %v1797_v60, %v1797_v60 }
 0xc0e   : > { %2360 = vmatmul.mubr.msk.bf16.vlgmr.msra.gmra.mrb[44].mxu0 %vm1113_vm5, %v1798_v4 }
 0xce1   : > { %v1841_v5 = vpop.f32.mrb[44].mxu0 }
 0xce2   : > { %v1847_v61 = vpack.c.bf16 %v1841_v5, %v1841_v5  ;;  %v2361_v62 = vpop.f32.mrb[45].mxu0 }
 0xce3   : > { %v1844_v63 = vpop.f32.mrb[46].mxu0 }
 0xce4   : > { %v2362_v0 = vpop.f32.mrb[47].mxu0  ;;  %2366 = vmatmul.mubr.msk.bf16.vlgmr.msra.gmra.mrb[44].mxu1 %vm1113_vm5, %v1847_v61 }
 0xdb7   : > { %v1890_v1 = vpop.f32.mrb[44].mxu1 }
 0xdb8   : > { %v1896_v9 = vadd.f32 %v1890_v1, %v1686_v44  ;;  %v2367_v10 = vpop.f32.mrb[45].mxu1 }
 0xdb9   : > { %v1893_v11 = vpop.f32.mrb[46].mxu1 }
 0xdba   : > { %v1904_v12 = vadd.f32 %v2132_v8, %v1896_v9  ;;  %v2368_v13 = vpop.f32.mrb[47].mxu1 }
 0xdbc   : > { %1905 = vst.msk [vmem:[%s281_s12] sm:$0xff] %vm1067_vm3, %v1904_v12 }
 0xdbd   : > { %2471 = shalt.err (!%p2468_p5)
}
 0xdbe   : > { %s2472_s20 = scalar_lea.hbm %s2977_s27, 128  ;;  %s2476_s26 = scalar_lea.hbm %s3039_s10, 256 }
 0xdbf   : > { %p2473_p6 = scmp.ne.s32.totalorder %s2977_s27, %s2472_s20  ;;  %p2477_p10 = scmp.lt.u32.totalorder %s2977_s27, %s3039_s10 }
 0xdc0   : > { %p2478_p11 = scmp.lt.u32.totalorder %s2476_s26, %s2472_s20  ;;  %p2480_p13 = scmp.lt.u32.totalorder %s2472_s20, %s2977_s27 }
 0xdc1   : > { %p2474_p7 = pnand %p2473_p6, %p2644_p4 }
 0xdc2   : > { %p2479_p12 = por %p2478_p11, %p2477_p10 }
 0xdc3   : > { %p2475_p9 = pneg %p2474_p7 }
 0xdc4   : > { %p2481_p0 = por %p2480_p13, %p2479_p12 }
 0xdc6   : > { %p2482_p1 = pnand %p2481_p0, %p2475_p9 }
 0xdc8   : > { %2485 = shalt.err (!%p2482_p1)
}
 0xdc9   : > { %2369 = dma.vmem_to_hbm [thread:$0]  (%p2644_p4), %s2979_s11, 128, %s2977_s27, %s1907_s22  }
 0xdca PF: > { %p2375_p2 = scmp.ge.s32.totalorder %s2544_s18, 2  ;;  %s1933_s19 = sand.u32 1, %s2524_s13  }
 0xdcb   : > { %s1934_s16 = scalar_lea.sflag [#allocation10], %s1933_s19 }
 0xdcc   : > { %p2372_p3 = pnand %p2375_p2, %p2651_p8 }
 0xdce   : > { %2519 = dma.done.wait (!%p2372_p3), %s1934_s16, 128  }
 0xdcf   : > { %2521 = vsyncadd (!%p2372_p3), %s1934_s16, 4294967168  ;;  %s23_s18 = sadd.s32 1, %s2544_s18   ;;  %s3051_s24 = sld [smem:[#allocation20_spill]] }
 0xdd0   : > { %p20_p5 = scmp.ge.s32.totalorder %s23_s18, 4   ;;  %s3052_s15 = sld [smem:[#allocation23_spill]] }
 0xdd1   : > { %s3053_s16 = sld [smem:[#allocation21_spill]]  ;;  %s3054_s17 = sld [smem:[#allocation22_spill]] }
 0xdd2   : > { %s3055_s13 = smov %s2528_s14  ;;  %22 = sbr.rel (!%p20_p5) target bundleno = 4 (0x4), region = 293 }
 0xdd5   : > { %s3056_s14 = smov %s3051_s24 }
 0xdd9   :  { %1939 = vsyncpa [#allocation10], 1 }
 0xdda   :  { %1941 = vsyncpa [#allocation10 + $0x1], 1 }
 0xddb   :  { %1942 = vsyncmov [#allocation8] }
 0xdde   :  { %s1943_s23 = vpop.sfrf %1942 }
 0xddf   :  { %p2137_p4 = scmp.ne.s32.totalorder %s1943_s23, 0 }
 0xde1   :  { %1947 = shalt.err (%p2137_p4)  }
 0xde2   :  { %1949 = vsyncmov [#allocation8 + $0x1] }
 0xde5   :  { %s1950_s25 = vpop.sfrf %1949 }
 0xde6   :  { %p2138_p8 = scmp.ne.s32.totalorder %s1950_s25, 0 }
 0xde8   :  { %1954 = shalt.err (%p2138_p8)  }
 0xde9   :  { %1956 = vsyncmov [#allocation8 + $0x2] }
 0xdec   :  { %s1957_s11 = vpop.sfrf %1956 }
 0xded   :  { %p2139_p6 = scmp.ne.s32.totalorder %s1957_s11, 0 }
 0xdef   :  { %1961 = shalt.err (%p2139_p6)  }
 0xdf0   :  { %1963 = vsyncmov [#allocation8 + $0x3] }
 0xdf3   :  { %s1964_s27 = vpop.sfrf %1963 }
 0xdf4   :  { %p2140_p7 = scmp.ne.s32.totalorder %s1964_s27, 0 }
 0xdf6   :  { %1968 = shalt.err (%p2140_p7)  }

</bundles_post_ra>
